<compile_context>
chip_gen: v7x
topology: tpu7x:2x2x1
jax: 0.10.0
libtpu: 0.0.40
codegen_flags: <defaults>
</compile_context>

<pallas_src>
import functools
import math

import jax
import jax.numpy as jnp
from jax import lax
from jax.experimental import pallas as pl
from jax.experimental.pallas import tpu as pltpu

FEAT_PAD = 128   # lane-dense feature width (input_dim+3 and hidden_dim padded to this)
NEG_BIG = -1e30  # additive mask value (finite -> no inf-inf NaNs in the softmax)


# ----------------------------------------------------------------------------
# Fused kernel: all GATConv layers + activation in one pallas_call
# ----------------------------------------------------------------------------
def _gat_fused_kernel(n_layers, hidden_dim,
                      h0_ref, adjb_ref, w_ref, att_ref, b_ref, out_ref):
    h = h0_ref[...]                                     # [Np, Fp] f32, resident across layers

    for l in range(n_layers):                           # n_layers is a static Python int
        w = w_ref[l]                                    # [Fp, Fp] bf16; col hidden_dim = W @ a_dst
        att_src = att_ref[l]                            # [1, Fp]  bf16 (a_src)
        b = b_ref[l]                                    # [1, Fp]  f32

        # node projection: x' = h @ W  (bf16 operands, f32 accumulation on MXU).
        xp = jnp.dot(h.astype(jnp.bfloat16), w,
                     preferred_element_type=jnp.float32)                      # [Np, Fp]
        xp_bf16 = xp.astype(jnp.bfloat16)                                     # cast once, reuse

        # destination logits fall out of the projection (a_dst folded into W's
        # free padded column); source logits via one thin bf16 MXU call that
        # also yields the [1, Np] row layout without any transpose.
        alpha_dst = xp[:, hidden_dim:hidden_dim + 1]                          # [Np, 1]
        alpha_src = lax.dot_general(att_src, xp_bf16, (((1,), (1,)), ((), ())),
                                    preferred_element_type=jnp.float32)       # [1, Np]

        e = alpha_dst + alpha_src                       # [Np, Np], e[i,j] = a_dst.x'_i + a_src.x'_j
        e = jnp.maximum(e, 0.2 * e)                     # LeakyReLU (0 < slope < 1)

        # masked softmax over incoming neighbours j via additive bf16 bias
        s = e + adjb_ref[...].astype(jnp.float32)       # 0 where edge / self-loop, -1e30 otherwise
        m = jnp.max(s, axis=-1, keepdims=True)
        p = jnp.exp(s - m)
        denom = jnp.sum(p, axis=-1, keepdims=True)      # >= 1 (self-loop), approx recip is safe
        attn = (p * pl.reciprocal(denom, approx=True)).astype(jnp.bfloat16)

        # aggregate neighbour features + bias, then activation
        agg = jnp.dot(attn, xp_bf16, preferred_element_type=jnp.float32) + b  # [Np, Fp]
        h = jnp.maximum(agg, 0.0)                       # ReLU activation

    out_ref[...] = h                                    # lane-dense [Np, Fp] store


# ----------------------------------------------------------------------------
# Parameter init (glorot for lin/att weights, zeros for bias; padded to 128).
# a_dst is folded into column `hidden_dim` of the padded W; a_src kept separate.
# Weights stored in bf16 (MXU-native), bias in f32.
# ----------------------------------------------------------------------------
def init_gat_params(key, input_dim, hidden_dim, n_layers):
    fan_in = input_dim + 3                              # coords concatenated
    assert fan_in <= FEAT_PAD and hidden_dim < FEAT_PAD  # need a free column for a_dst fold
    keys = jax.random.split(key, n_layers)
    w_list, att_list, b_list = [], [], []
    for i in range(n_layers):
        kw, ka = jax.random.split(keys[i])
        w_bound = math.sqrt(6.0 / (fan_in + hidden_dim))
        w = jax.random.uniform(kw, (fan_in, hidden_dim), jnp.float32, -w_bound, w_bound)
        a_bound = math.sqrt(6.0 / (hidden_dim + 1))
        att = jax.random.uniform(ka, (2, hidden_dim), jnp.float32, -a_bound, a_bound)
        a_src, a_dst = att[0], att[1]

        w_p = jnp.zeros((FEAT_PAD, FEAT_PAD), jnp.float32)
        w_p = w_p.at[:fan_in, :hidden_dim].set(w)
        # fold a_dst: xp[:, hidden_dim] = (h @ W) @ a_dst = a_dst . x'_i
        w_p = w_p.at[:fan_in, hidden_dim].set(w @ a_dst)

        att_p = jnp.zeros((1, FEAT_PAD), jnp.float32).at[0, :hidden_dim].set(a_src)
        b_p = jnp.zeros((1, FEAT_PAD), jnp.float32)     # GATConv bias init = zeros

        w_list.append(w_p.astype(jnp.bfloat16))
        att_list.append(att_p.astype(jnp.bfloat16))
        b_list.append(b_p)
        fan_in = hidden_dim
    return {
        "w": jnp.stack(w_list),         # [L, 128, 128] bf16 (a_dst folded into col hidden_dim)
        "att_src": jnp.stack(att_list), # [L, 1, 128]   bf16
        "b": jnp.stack(b_list),         # [L, 1, 128]   f32
    }


def _cost_estimate(n_pad, f_pad, n_layers):
    per_layer = (2 * n_pad * f_pad * f_pad              # projection
                 + 2 * n_pad * f_pad                    # alpha_src
                 + 8 * n_pad * n_pad                    # leakyrelu + bias add + softmax elementwise
                 + 2 * n_pad * n_pad * f_pad)           # aggregation
    flops = n_layers * per_layer
    transcendentals = n_layers * (n_pad * n_pad + n_pad)
    bytes_accessed = (4 * n_pad * f_pad                 # h0 in
                      + 2 * n_pad * n_pad               # bf16 adjacency bias
                      + n_layers * (2 * f_pad * f_pad + 2 * f_pad + 4 * f_pad)
                      + 4 * n_pad * f_pad)              # output writeback
    return pl.CostEstimate(flops=flops, transcendentals=transcendentals,
                           bytes_accessed=bytes_accessed)


# ----------------------------------------------------------------------------
# Forward pass wrapper (padding / dense-adjacency construction is cheap glue)
# ----------------------------------------------------------------------------
def gat_forward(params, h, coords, edge_index, *, n_nodes, hidden_dim):
    n_layers = params["w"].shape[0]
    n_pad = -(-n_nodes // 128) * 128                    # lane-dense node dim for [Np, Np] scores

    # torch.cat([h, coords], dim=3) -> feature-dim concat on [N, F] node features
    h_cat = jnp.concatenate([h, coords], axis=-1)       # [N, input_dim + 3]
    h0 = jnp.zeros((n_pad, FEAT_PAD), jnp.float32).at[:n_nodes, :h_cat.shape[1]].set(h_cat)

    # additive bf16 adjacency bias: 0 where edge j -> i (src=edge_index[0],
    # dst=edge_index[1]) or self-loop (GATConv add_self_loops=True), -1e30 otherwise.
    adj = jnp.zeros((n_pad, n_pad), jnp.float32)
    adj = adj.at[edge_index[1], edge_index[0]].set(1.0)
    diag = jnp.arange(n_pad)
    adj = adj.at[diag, diag].set(1.0)
    adj_bias = jnp.where(adj > 0, 0.0, NEG_BIG).astype(jnp.bfloat16)

    out_bytes = n_pad * FEAT_PAD * 4
    resident = (h0.size * 4 + adj_bias.size * 2 + params["w"].size * 2
                + params["att_src"].size * 2 + params["b"].size * 4 + out_bytes)
    vmem_limit = int(min(64 << 20, 2 * resident + (8 << 20)))

    vmem = pl.BlockSpec(memory_space=pltpu.MemorySpace.VMEM)
    out = pl.pallas_call(
        functools.partial(_gat_fused_kernel, n_layers, hidden_dim),
        out_shape=jax.ShapeDtypeStruct((n_pad, FEAT_PAD), jnp.float32),
        in_specs=[vmem] * 5,
        out_specs=vmem,
        compiler_params=pltpu.CompilerParams(vmem_limit_bytes=vmem_limit),
        cost_estimate=_cost_estimate(n_pad, FEAT_PAD, n_layers),
    )(h0, adj_bias, params["w"], params["att_src"], params["b"])

    return out[:n_nodes, :hidden_dim]


if __name__ == "__main__":
    INPUT_DIM = 29           # +3 coord features -> 32 input features
    HIDDEN_DIM = 32
    N_LAYERS = 2
    N_NODES = 64
    N_EDGES = 256

    key = jax.random.PRNGKey(0)
    kp, kh, kc, ks, kd = jax.random.split(key, 5)

    params = init_gat_params(kp, INPUT_DIM, HIDDEN_DIM, N_LAYERS)
    h = jax.random.normal(kh, (N_NODES, INPUT_DIM), jnp.float32)
    coords = jax.random.normal(kc, (N_NODES, 3), jnp.float32)
    edge_index = jnp.stack([
        jax.random.randint(ks, (N_EDGES,), 0, N_NODES),   # source nodes
        jax.random.randint(kd, (N_EDGES,), 0, N_NODES),   # target nodes
    ], axis=0)

    fwd = jax.jit(functools.partial(gat_forward, n_nodes=N_NODES, hidden_dim=HIDDEN_DIM))
    out = fwd(params, h, coords, edge_index)
    jax.block_until_ready(out)
    assert out.shape == (N_NODES, HIDDEN_DIM) and out.dtype == jnp.float32
    assert bool(jnp.all(jnp.isfinite(out)))
    print("KERNEL_OK")
</pallas_src>

<mosaic_0001>
module attributes {stable_mosaic.version = 11 : i64} {
  func.func @_gat_fused_kernel(%arg0: memref<128x128xf32, #tpu.memory_space<vmem>>, %arg1: memref<128x128xbf16, #tpu.memory_space<vmem>>, %arg2: memref<2x128x128xbf16, #tpu.memory_space<vmem>>, %arg3: memref<2x1x128xbf16, #tpu.memory_space<vmem>>, %arg4: memref<2x1x128xf32, #tpu.memory_space<vmem>>, %arg5: memref<128x128xf32, #tpu.memory_space<vmem>>) attributes {dimension_semantics = [], scalar_prefetch = 0 : i64, scratch_operands = 0 : i64, tpu.core_type = #tpu.core_type<tc>} {
    %c0 = arith.constant 0 : index
    %c0_0 = arith.constant 0 : index
    %0 = vector.load %arg0[%c0, %c0_0] : memref<128x128xf32, #tpu.memory_space<vmem>>, vector<128x128xf32>
    %c0_1 = arith.constant 0 : index
    %c0_2 = arith.constant 0 : index
    %c0_3 = arith.constant 0 : index
    %1 = vector.load %arg2[%c0_1, %c0_2, %c0_3] : memref<2x128x128xbf16, #tpu.memory_space<vmem>>, vector<1x128x128xbf16>
    %2 = vector.shape_cast %1 : vector<1x128x128xbf16> to vector<128x128xbf16>
    %c0_4 = arith.constant 0 : index
    %c0_5 = arith.constant 0 : index
    %c0_6 = arith.constant 0 : index
    %3 = vector.load %arg3[%c0_4, %c0_5, %c0_6] : memref<2x1x128xbf16, #tpu.memory_space<vmem>>, vector<1x1x128xbf16>
    %4 = vector.shape_cast %3 : vector<1x1x128xbf16> to vector<1x128xbf16>
    %c0_7 = arith.constant 0 : index
    %c0_8 = arith.constant 0 : index
    %c0_9 = arith.constant 0 : index
    %5 = vector.load %arg4[%c0_7, %c0_8, %c0_9] : memref<2x1x128xf32, #tpu.memory_space<vmem>>, vector<1x1x128xf32>
    %6 = vector.shape_cast %5 : vector<1x1x128xf32> to vector<1x128xf32>
    %7 = arith.truncf %0 : vector<128x128xf32> to vector<128x128xbf16>
    %cst = arith.constant dense<0.000000e+00> : vector<128x128xf32>
    %8 = tpu.matmul %7, %2, %cst {dimension_numbers = #tpu.dot_dimension_numbers<[1], [0], [0], [1], [0, 0, 1, 1], [], []>} : vector<128x128xbf16>, vector<128x128xbf16>, vector<128x128xf32> -> vector<128x128xf32>
    %9 = arith.truncf %8 : vector<128x128xf32> to vector<128x128xbf16>
    %10 = vector.extract_strided_slice %8 {offsets = [0, 32], sizes = [128, 1], strides = [1, 1]} : vector<128x128xf32> to vector<128x1xf32>
    %cst_10 = arith.constant dense<0.000000e+00> : vector<1x128xf32>
    %11 = tpu.matmul %4, %9, %cst_10 {dimension_numbers = #tpu.dot_dimension_numbers<[1], [1], [0], [0], [0, 0, 1, 0], [], []>} : vector<1x128xbf16>, vector<128x128xbf16>, vector<1x128xf32> -> vector<1x128xf32>
    %12 = vector.broadcast %10 : vector<128x1xf32> to vector<128x128xf32>
    %13 = vector.broadcast %11 : vector<1x128xf32> to vector<128x128xf32>
    %14 = arith.addf %12, %13 : vector<128x128xf32>
    %cst_11 = arith.constant 2.000000e-01 : f32
    %15 = vector.broadcast %cst_11 : f32 to vector<128x128xf32>
    %16 = arith.mulf %15, %14 : vector<128x128xf32>
    %17 = arith.maximumf %14, %16 : vector<128x128xf32>
    %c0_12 = arith.constant 0 : index
    %c0_13 = arith.constant 0 : index
    %18 = vector.load %arg1[%c0_12, %c0_13] : memref<128x128xbf16, #tpu.memory_space<vmem>>, vector<128x128xbf16>
    %19 = arith.extf %18 : vector<128x128xbf16> to vector<128x128xf32>
    %20 = arith.addf %17, %19 : vector<128x128xf32>
    %cst_14 = arith.constant dense<0xFF800000> : vector<128xf32>
    %21 = vector.multi_reduction <maximumf>, %20, %cst_14 [1] : vector<128x128xf32> to vector<128xf32>
    %22 = vector.shape_cast %21 : vector<128xf32> to vector<128x1xf32>
    %23 = vector.broadcast %22 : vector<128x1xf32> to vector<128x128xf32>
    %24 = arith.subf %20, %23 : vector<128x128xf32>
    %25 = math.exp %24 : vector<128x128xf32>
    %cst_15 = arith.constant dense<0.000000e+00> : vector<128xf32>
    %26 = vector.multi_reduction <add>, %25, %cst_15 [1] : vector<128x128xf32> to vector<128xf32>
    %27 = vector.shape_cast %26 : vector<128xf32> to vector<128x1xf32>
    %28 = tpu.reciprocal %27 {approx = true} : vector<128x1xf32> -> vector<128x1xf32>
    %29 = vector.broadcast %28 : vector<128x1xf32> to vector<128x128xf32>
    %30 = arith.mulf %25, %29 : vector<128x128xf32>
    %31 = arith.truncf %30 : vector<128x128xf32> to vector<128x128xbf16>
    %cst_16 = arith.constant dense<0.000000e+00> : vector<128x128xf32>
    %32 = tpu.matmul %31, %9, %cst_16 {dimension_numbers = #tpu.dot_dimension_numbers<[1], [0], [0], [1], [0, 0, 1, 1], [], []>} : vector<128x128xbf16>, vector<128x128xbf16>, vector<128x128xf32> -> vector<128x128xf32>
    %33 = vector.broadcast %6 : vector<1x128xf32> to vector<128x128xf32>
    %34 = arith.addf %32, %33 : vector<128x128xf32>
    %cst_17 = arith.constant 0.000000e+00 : f32
    %35 = vector.broadcast %cst_17 : f32 to vector<128x128xf32>
    %36 = arith.maximumf %34, %35 : vector<128x128xf32>
    %c1 = arith.constant 1 : index
    %c0_18 = arith.constant 0 : index
    %c0_19 = arith.constant 0 : index
    %37 = vector.load %arg2[%c1, %c0_18, %c0_19] : memref<2x128x128xbf16, #tpu.memory_space<vmem>>, vector<1x128x128xbf16>
    %38 = vector.shape_cast %37 : vector<1x128x128xbf16> to vector<128x128xbf16>
    %c1_20 = arith.constant 1 : index
    %c0_21 = arith.constant 0 : index
    %c0_22 = arith.constant 0 : index
    %39 = vector.load %arg3[%c1_20, %c0_21, %c0_22] : memref<2x1x128xbf16, #tpu.memory_space<vmem>>, vector<1x1x128xbf16>
    %40 = vector.shape_cast %39 : vector<1x1x128xbf16> to vector<1x128xbf16>
    %c1_23 = arith.constant 1 : index
    %c0_24 = arith.constant 0 : index
    %c0_25 = arith.constant 0 : index
    %41 = vector.load %arg4[%c1_23, %c0_24, %c0_25] : memref<2x1x128xf32, #tpu.memory_space<vmem>>, vector<1x1x128xf32>
    %42 = vector.shape_cast %41 : vector<1x1x128xf32> to vector<1x128xf32>
    %43 = arith.truncf %36 : vector<128x128xf32> to vector<128x128xbf16>
    %cst_26 = arith.constant dense<0.000000e+00> : vector<128x128xf32>
    %44 = tpu.matmul %43, %38, %cst_26 {dimension_numbers = #tpu.dot_dimension_numbers<[1], [0], [0], [1], [0, 0, 1, 1], [], []>} : vector<128x128xbf16>, vector<128x128xbf16>, vector<128x128xf32> -> vector<128x128xf32>
    %45 = arith.truncf %44 : vector<128x128xf32> to vector<128x128xbf16>
    %46 = vector.extract_strided_slice %44 {offsets = [0, 32], sizes = [128, 1], strides = [1, 1]} : vector<128x128xf32> to vector<128x1xf32>
    %cst_27 = arith.constant dense<0.000000e+00> : vector<1x128xf32>
    %47 = tpu.matmul %40, %45, %cst_27 {dimension_numbers = #tpu.dot_dimension_numbers<[1], [1], [0], [0], [0, 0, 1, 0], [], []>} : vector<1x128xbf16>, vector<128x128xbf16>, vector<1x128xf32> -> vector<1x128xf32>
    %48 = vector.broadcast %46 : vector<128x1xf32> to vector<128x128xf32>
    %49 = vector.broadcast %47 : vector<1x128xf32> to vector<128x128xf32>
    %50 = arith.addf %48, %49 : vector<128x128xf32>
    %cst_28 = arith.constant 2.000000e-01 : f32
    %51 = vector.broadcast %cst_28 : f32 to vector<128x128xf32>
    %52 = arith.mulf %51, %50 : vector<128x128xf32>
    %53 = arith.maximumf %50, %52 : vector<128x128xf32>
    %c0_29 = arith.constant 0 : index
    %c0_30 = arith.constant 0 : index
    %54 = vector.load %arg1[%c0_29, %c0_30] : memref<128x128xbf16, #tpu.memory_space<vmem>>, vector<128x128xbf16>
    %55 = arith.extf %54 : vector<128x128xbf16> to vector<128x128xf32>
    %56 = arith.addf %53, %55 : vector<128x128xf32>
    %cst_31 = arith.constant dense<0xFF800000> : vector<128xf32>
    %57 = vector.multi_reduction <maximumf>, %56, %cst_31 [1] : vector<128x128xf32> to vector<128xf32>
    %58 = vector.shape_cast %57 : vector<128xf32> to vector<128x1xf32>
    %59 = vector.broadcast %58 : vector<128x1xf32> to vector<128x128xf32>
    %60 = arith.subf %56, %59 : vector<128x128xf32>
    %61 = math.exp %60 : vector<128x128xf32>
    %cst_32 = arith.constant dense<0.000000e+00> : vector<128xf32>
    %62 = vector.multi_reduction <add>, %61, %cst_32 [1] : vector<128x128xf32> to vector<128xf32>
    %63 = vector.shape_cast %62 : vector<128xf32> to vector<128x1xf32>
    %64 = tpu.reciprocal %63 {approx = true} : vector<128x1xf32> -> vector<128x1xf32>
    %65 = vector.broadcast %64 : vector<128x1xf32> to vector<128x128xf32>
    %66 = arith.mulf %61, %65 : vector<128x128xf32>
    %67 = arith.truncf %66 : vector<128x128xf32> to vector<128x128xbf16>
    %cst_33 = arith.constant dense<0.000000e+00> : vector<128x128xf32>
    %68 = tpu.matmul %67, %45, %cst_33 {dimension_numbers = #tpu.dot_dimension_numbers<[1], [0], [0], [1], [0, 0, 1, 1], [], []>} : vector<128x128xbf16>, vector<128x128xbf16>, vector<128x128xf32> -> vector<128x128xf32>
    %69 = vector.broadcast %42 : vector<1x128xf32> to vector<128x128xf32>
    %70 = arith.addf %68, %69 : vector<128x128xf32>
    %cst_34 = arith.constant 0.000000e+00 : f32
    %71 = vector.broadcast %cst_34 : f32 to vector<128x128xf32>
    %72 = arith.maximumf %70, %71 : vector<128x128xf32>
    %c0_35 = arith.constant 0 : index
    %c0_36 = arith.constant 0 : index
    %73 = vector.load %arg5[%c0_35, %c0_36] : memref<128x128xf32, #tpu.memory_space<vmem>>, vector<128x128xf32>
    tpu.vector_store %arg5[%c0_35, %c0_36], %72 {strides = array<i32>} : memref<128x128xf32, #tpu.memory_space<vmem>>, vector<128x128xf32>,
    return
  }
}

</mosaic_0001>

<bundles_post_ra>
// kernel: gat_forward.1
= control target key start
LH: loop header
LB: loop body
LE: loop exit
PB: predicated region body
PF: predicated region fallthrough
CT: control target
= control target key end

     0   :  { %v1842_v1 = vmov 32   ;;  %v1843_v33 = vmov 0.0   ;;  %vm1844_vm0 = vmmov 0   ;;  %v336_v61 = vlaneseq  ;;  %s2470_s2 = inlined_call_operand.vmem [shape: bf16[2,128,128], index: 2, kind: input, shape index: {}]   ;;  %s2471_s0 = inlined_call_operand.vmem [shape: f32[128,128], index: 0, kind: input, shape index: {}]   ;;  %s2472_s3 = inlined_call_operand.vmem [shape: bf16[2,1,128], index: 3, kind: input, shape index: {}]   ;;  %s2473_s1 = inlined_call_operand.vmem [shape: bf16[128,128], index: 1, kind: input, shape index: {}]   ;;  %s2474_s4 = inlined_call_operand.vmem [shape: f32[2,1,128], index: 4, kind: input, shape index: {}]   ;;  %s2475_s5 = inlined_call_operand.vmem [shape: f32[128,128], index: 5, kind: output, shape index: {}]  }
   0x1   :  { %v1698_v0 = vld [vmem:[%s2470_s2] sm:$0xff]   ;;  %1697 = vset.pattern.permute.xlu1 %v1842_v1  ;;  %1696 = vset.pattern.permute.xlu0 %v1842_v1  ;;  %v1699_v2 = vld [vmem:[%s2470_s2 + $0x8] sm:$0xff]   ;;  %v1700_v3 = vld [vmem:[%s2470_s2 + $0x10] sm:$0xff]  }
   0x2   :  { %1525 = vmatprep.subr.bf16.mxu0 %v1698_v0  ;;  %v1701_v4 = vld [vmem:[%s2470_s2 + $0x18] sm:$0xff]   ;;  %v21_v5 = vld [vmem:[%s2471_s0] sm:$0xff]  ;;  %v22_v6 = vld [vmem:[%s2471_s0 + $0x8] sm:$0xff]  ;;  %1557 = vmatprep.subr.bf16.mxu1 %v1843_v33 }
   0x3   :  { %1526 = vmatpush3.bf16.msra.mxu0 %v1698_v0  ;;  %v55_v7 = vpack.c.bf16 %v22_v6, %v21_v5  ;;  %v1702_v8 = vld [vmem:[%s2470_s2 + $0x20] sm:$0xff]   ;;  %v1703_v9 = vld [vmem:[%s2470_s2 + $0x28] sm:$0xff]   ;;  %v1704_v10 = vld [vmem:[%s2470_s2 + $0x30] sm:$0xff]   ;;  %1573 = vmatprep.mubr.msk.bf16.mxu1 %vm1844_vm0, %v1843_v33  ;;  %v1963_v0 = vshrl.u32 %v336_v61, 7 }
   0x4   :  { %1527 = vmatprep.subr.bf16.mxu0 %v1699_v2  ;;  %v1705_v11 = vld [vmem:[%s2470_s2 + $0x38] sm:$0xff]   ;;  %v23_v12 = vld [vmem:[%s2471_s0 + $0x10] sm:$0xff]  ;;  %v25_v14 = vld [vmem:[%s2471_s0 + $0x20] sm:$0xff] }
   0x5   :  { %1541 = vmatprep.mubr.bf16.mxu0 %v55_v7  ;;  %v24_v13 = vld [vmem:[%s2471_s0 + $0x18] sm:$0xff]  ;;  %v26_v15 = vld [vmem:[%s2471_s0 + $0x28] sm:$0xff]  ;;  %v27_v18 = vld [vmem:[%s2471_s0 + $0x30] sm:$0xff] }
   0x6   :  { %v56_v16 = vpack.c.bf16 %v24_v13, %v23_v12  ;;  %v57_v17 = vpack.c.bf16 %v26_v15, %v25_v14  ;;  %v28_v19 = vld [vmem:[%s2471_s0 + $0x38] sm:$0xff]  ;;  %v29_v20 = vld [vmem:[%s2471_s0 + $0x40] sm:$0xff]  ;;  %v30_v21 = vld [vmem:[%s2471_s0 + $0x48] sm:$0xff] }
   0x7   :  { %1528 = vmatpush3.bf16.msra.mxu0 %v1699_v2  ;;  %v58_v22 = vpack.c.bf16 %v28_v19, %v27_v18  ;;  %v59_v23 = vpack.c.bf16 %v30_v21, %v29_v20  ;;  %v31_v24 = vld [vmem:[%s2471_s0 + $0x50] sm:$0xff]  ;;  %v32_v25 = vld [vmem:[%s2471_s0 + $0x58] sm:$0xff]  ;;  %v33_v26 = vld [vmem:[%s2471_s0 + $0x60] sm:$0xff] }
   0x8   :  { %1529 = vmatprep.subr.bf16.mxu0 %v1700_v3  ;;  %v34_v27 = vld [vmem:[%s2471_s0 + $0x68] sm:$0xff]  ;;  %v60_v28 = vpack.c.bf16 %v32_v25, %v31_v24  ;;  %v35_v30 = vld [vmem:[%s2471_s0 + $0x70] sm:$0xff]  ;;  %v36_v31 = vld [vmem:[%s2471_s0 + $0x78] sm:$0xff] }
   0x9   :  { %v61_v29 = vpack.c.bf16 %v34_v27, %v33_v26  ;;  %v62_v32 = vpack.c.bf16 %v36_v31, %v35_v30  ;;  %v53_v58 = vld [vmem:[%s2472_s3] sm:$0x1]  ;;  %v1988_v18 = vld [vmem:[%s2473_s1 + $0x8] sm:$0xff]  }
   0xa   :  { %v1410_v31 = vunpack.c.l.bf16 %v1988_v18 }
   0xb   :  { %1530 = vmatpush3.bf16.msra.mxu0 %v1700_v3  ;;  %v338_v3 = vsub.s32 0, %v1963_v0 }
   0xc   :  { %1531 = vmatprep.subr.bf16.mxu0 %v1701_v4 }
   0xf   :  { %1532 = vmatpush3.bf16.msra.mxu0 %v1701_v4 }
  0x10   :  { %1533 = vmatprep.subr.bf16.mxu0 %v1702_v8 }
  0x13   :  { %1534 = vmatpush3.bf16.msra.mxu0 %v1702_v8 }
  0x14   :  { %1535 = vmatprep.subr.bf16.mxu0 %v1703_v9 }
  0x17   :  { %1536 = vmatpush3.bf16.msra.mxu0 %v1703_v9  ;;  %v1973_v9 = vld [vmem:[%s2473_s1] sm:$0xff]  }
  0x18   :  { %1537 = vmatprep.subr.bf16.mxu0 %v1704_v10 }
  0x1b   :  { %1538 = vmatpush3.bf16.msra.mxu0 %v1704_v10 }
  0x1c   :  { %1539 = vmatprep.subr.bf16.mxu0 %v1705_v11 }
  0x1f   :  { %1540 = vmatpush3.bf16.msra.mxu0 %v1705_v11 }
  0x22   :  { %1542 = vmatmul.mubr.bf16.vlgmr.msra.gmra.mrb[0].mxu0 %v56_v16  ;;  %v1407_v16 = vunpack.c.h.bf16 %v1973_v9 }
  0x23   :  { %1545 = vmatprep.mubr.bf16.mxu0 %v57_v17  ;;  %v1983_v17 = vld [vmem:[%s2473_s1 + $0x10] sm:$0xff]  }
  0x24   :  { %v1414_v30 = vunpack.c.l.bf16 %v1983_v17 }
  0x2a   :  { %1546 = vmatmul.mubr.bf16.gmra.mrb[4].mxu0 %v58_v22 }
  0x2b   :  { %1549 = vmatprep.mubr.bf16.mxu0 %v59_v23  ;;  %v1406_v23 = vunpack.c.l.bf16 %v1973_v9 }
  0x32   :  { %1550 = vmatmul.mubr.bf16.gmra.mrb[8].mxu0 %v60_v28 }
  0x33   :  { %1553 = vmatprep.mubr.bf16.mxu0 %v61_v29 }
  0x3a   :  { %1554 = vmatmul.mubr.bf16.gmra.mrb[12].mxu0 %v62_v32 }
  0xf5   :  { %v1543_v34 = vpop.f32.mrb[0].mxu0 }
  0xf6   :  { %268 = vperm.xlu1 %1697, %v1543_v34   ;;  %v145_v35 = vpop.f32.mrb[1].mxu0 }
  0xf7   :  { %258 = vperm.xlu0 %1696, %v145_v35   ;;  %v1544_v36 = vpop.f32.mrb[2].mxu0 }
  0xf8   :  { %v209_v37 = vpack.c.bf16 %v1544_v36, %v1543_v34  ;;  %v148_v38 = vpop.f32.mrb[3].mxu0  ;;  %v1998_v34 = vld [vmem:[%s2473_s1 + $0x18] sm:$0xff]  }
  0xf9   :  { %v208_v39 = vpack.c.bf16 %v148_v38, %v145_v35 }
  0xfa   :  { %273 = vperm.xlu1 %1697, %v1544_v36  }
  0xfb   :  { %263 = vperm.xlu0 %1696, %v148_v38   ;;  %1558 = vmatpush3.bf16.xpose.msra.mxu1 %v208_v39 }
  0xfc   :  { %1577 = vmatprep.subr.bf16.mxu0 %v208_v39  ;;  %1559 = vmatprep.subr.bf16.mxu1 %v1843_v33 }
  0xfd   :  { %1578 = vmatpush3.bf16.msra.mxu0 %v208_v39  ;;  %v1547_v40 = vpop.f32.mrb[4].mxu0 }
  0xfe   :  { %1579 = vmatprep.subr.bf16.mxu0 %v209_v37  ;;  %v161_v41 = vpop.f32.mrb[5].mxu0 }
  0xff   :  { %v1548_v42 = vpop.f32.mrb[6].mxu0  ;;  %278 = vperm.xlu0 %1696, %v161_v41  }
 0x100   :  { %v211_v43 = vpack.c.bf16 %v1548_v42, %v1547_v40  ;;  %v164_v44 = vpop.f32.mrb[7].mxu0 }
 0x101   :  { %v210_v45 = vpack.c.bf16 %v164_v44, %v161_v41  ;;  %1580 = vmatpush3.bf16.msra.mxu0 %v209_v37  ;;  %283 = vperm.xlu1 %1697, %v164_v44   ;;  %v1418_v44 = vunpack.c.l.bf16 %v1998_v34 }
 0x103   :  { %1560 = vmatpush3.bf16.xpose.msra.mxu1 %v209_v37  ;;  %1581 = vmatprep.subr.bf16.mxu0 %v210_v45 }
 0x104   :  { %288 = vperm.xlu0 %1696, %v1547_v40   ;;  %1561 = vmatprep.subr.bf16.mxu1 %v1843_v33 }
 0x105   :  { %1582 = vmatpush3.bf16.msra.mxu0 %v210_v45  ;;  %293 = vperm.xlu1 %1697, %v1548_v42   ;;  %v1551_v46 = vpop.f32.mrb[8].mxu0 }
 0x106   :  { %1583 = vmatprep.subr.bf16.mxu0 %v211_v43  ;;  %v177_v47 = vpop.f32.mrb[9].mxu0 }
 0x107   :  { %v1552_v48 = vpop.f32.mrb[10].mxu0 }
 0x108   :  { %v213_v49 = vpack.c.bf16 %v1552_v48, %v1551_v46  ;;  %v180_v50 = vpop.f32.mrb[11].mxu0  ;;  %298 = vperm.xlu0 %1696, %v177_v47  }
 0x109   :  { %1584 = vmatpush3.bf16.msra.mxu0 %v211_v43  ;;  %v212_v51 = vpack.c.bf16 %v180_v50, %v177_v47  ;;  %303 = vperm.xlu1 %1697, %v180_v50  }
 0x10b   :  { %1562 = vmatpush3.bf16.xpose.msra.mxu1 %v210_v45  ;;  %1585 = vmatprep.subr.bf16.mxu0 %v212_v51  ;;  %v1411_v45 = vunpack.c.h.bf16 %v1988_v18 }
 0x10c   :  { %1563 = vmatprep.subr.bf16.mxu1 %v1843_v33  ;;  %308 = vperm.xlu0 %1696, %v1551_v46  }
 0x10d   :  { %1586 = vmatpush3.bf16.msra.mxu0 %v212_v51  ;;  %313 = vperm.xlu1 %1697, %v1552_v48   ;;  %v1555_v52 = vpop.f32.mrb[12].mxu0 }
 0x10e   :  { %1587 = vmatprep.subr.bf16.mxu0 %v213_v49  ;;  %v193_v53 = vpop.f32.mrb[13].mxu0 }
 0x10f   :  { %v1556_v54 = vpop.f32.mrb[14].mxu0 }
 0x110   :  { %v215_v55 = vpack.c.bf16 %v1556_v54, %v1555_v52  ;;  %v196_v56 = vpop.f32.mrb[15].mxu0  ;;  %328 = vperm.xlu0 %1696, %v1555_v52  }
 0x111   :  { %1588 = vmatpush3.bf16.msra.mxu0 %v213_v49  ;;  %v214_v57 = vpack.c.bf16 %v196_v56, %v193_v53  ;;  %323 = vperm.xlu1 %1697, %v196_v56   ;;  %v1415_v56 = vunpack.c.h.bf16 %v1983_v17 }
 0x113   :  { %1564 = vmatpush3.bf16.xpose.msra.mxu1 %v211_v43  ;;  %1589 = vmatprep.subr.bf16.mxu0 %v214_v57 }
 0x114   :  { %1565 = vmatprep.subr.bf16.mxu1 %v1843_v33  ;;  %318 = vperm.xlu0 %1696, %v193_v53  }
 0x115   :  { %1590 = vmatpush3.bf16.msra.mxu0 %v214_v57  ;;  %333 = vperm.xlu1 %1697, %v1556_v54  }
 0x116   :  { %1591 = vmatprep.subr.bf16.mxu0 %v215_v55 }
 0x119   :  { %1592 = vmatpush3.bf16.msra.mxu0 %v215_v55 }
 0x11b   :  { %1566 = vmatpush3.bf16.xpose.msra.mxu1 %v212_v51 }
 0x11c   :  { %1567 = vmatprep.subr.bf16.mxu1 %v1843_v33 }
 0x123   :  { %1568 = vmatpush3.bf16.xpose.msra.mxu1 %v213_v49  ;;  %v2017_v49 = vld [vmem:[%s2473_s1 + $0x20] sm:$0xff]  }
 0x124   :  { %1569 = vmatprep.subr.bf16.mxu1 %v1843_v33 }
 0x12b   :  { %1570 = vmatpush3.bf16.xpose.msra.mxu1 %v214_v57 }
 0x12c   :  { %1571 = vmatprep.subr.bf16.mxu1 %v1843_v33 }
 0x133   :  { %1572 = vmatpush3.bf16.xpose.msra.mxu1 %v215_v55  ;;  %v1422_v55 = vunpack.c.l.bf16 %v2017_v49 }
 0x134   :  { %1641 = vmatprep.subr.bf16.mxu1 %v1843_v33 }
 0x13a   :  { %1574 = vmatmul.mubr.bf16.vlgmr.msra.gmra.mrb[0].mxu1 %v53_v58 }
 0x13b   :  { %1657 = vmatprep.mubr.msk.bf16.mxu1 %vm1844_vm0, %v1843_v33 }
 0x175   :  { %v269_v63 = vpop.permute.xlu1 %268 }
 0x176   :  { %v259_v59 = vpop.permute.xlu0 %258 }
 0x179   :  { %v274_v2 = vpop.permute.xlu1 %273 }
 0x17a   :  { %v264_v60 = vpop.permute.xlu0 %263 }
 0x17e   :  { %v279_v62 = vpop.permute.xlu0 %278 }
 0x180   :  { %v284_v6 = vpop.permute.xlu1 %283 }
 0x183   :  { %v289_v1 = vpop.permute.xlu0 %288 }
 0x184   :  { %v294_v27 = vpop.permute.xlu1 %293 }
 0x187   :  { %v299_v4 = vpop.permute.xlu0 %298 }
 0x188   :  { %v304_v43 = vpop.permute.xlu1 %303 }
 0x18b   :  { %v309_v25 = vpop.permute.xlu0 %308 }
 0x18f   :  { %v329_v42 = vpop.permute.xlu0 %328 }
 0x193   :  { %v319_v57 = vpop.permute.xlu0 %318 }
 0x20d   :  { %v250_v5 = vpop.f32.mrb[0].mxu1 }
 0x20e   :  { %v1968_v7 = vrot.slane %v250_v5, %v338_v3  ;;  %v1575_v8 = vpop.f32.mrb[1].mxu1 }
 0x20f   :  { %v253_v10 = vpop.f32.mrb[2].mxu1  ;;  %v1419_v8 = vunpack.c.h.bf16 %v1998_v34 }
 0x210   :  { %v1576_v11 = vpop.f32.mrb[3].mxu1  ;;  %v341_v12 = vadd.f32 %v1968_v7, %v264_v60  ;;  %v340_v13 = vadd.f32 %v1968_v7, %v259_v59  ;;  %v344_v14 = vadd.f32 %v1968_v7, %v279_v62  ;;  %v342_v15 = vadd.f32 %v1968_v7, %v269_v63  ;;  %v2044_v62 = vld [vmem:[%s2473_s1 + $0x28] sm:$0xff]   ;;  %v314_v63 = vpop.permute.xlu1 %313 }
 0x211   :  { %v346_v19 = vadd.f32 %v1968_v7, %v289_v1  ;;  %v343_v20 = vadd.f32 %v1968_v7, %v274_v2  ;;  %v348_v36 = vadd.f32 %v1968_v7, %v299_v4  ;;  %v345_v37 = vadd.f32 %v1968_v7, %v284_v6 }
 0x212   :  { %v357_v21 = vmul.f32 0.2, %v341_v12  ;;  %v356_v22 = vmul.f32 0.2, %v340_v13  ;;  %v360_v24 = vmul.f32 0.2, %v344_v14  ;;  %v350_v53 = vadd.f32 %v1968_v7, %v309_v25 }
 0x213   :  { %v358_v26 = vmul.f32 0.2, %v342_v15  ;;  %v362_v32 = vmul.f32 0.2, %v346_v19  ;;  %v359_v35 = vmul.f32 0.2, %v343_v20  ;;  %v347_v54 = vadd.f32 %v1968_v7, %v294_v27 }
 0x214   :  { %v373_v28 = vmax.f32 %v341_v12, %v357_v21  ;;  %v372_v29 = vmax.f32 %v340_v13, %v356_v22  ;;  %v376_v40 = vmax.f32 %v344_v14, %v360_v24  ;;  %v364_v48 = vmul.f32 0.2, %v348_v36  ;;  %v2063_v12 = vld [vmem:[%s2473_s1 + $0x30] sm:$0xff]  }
 0x215   :  { %v374_v41 = vmax.f32 %v342_v15, %v358_v26  ;;  %v378_v46 = vmax.f32 %v346_v19, %v362_v32  ;;  %v375_v47 = vmax.f32 %v343_v20, %v359_v35  ;;  %v361_v50 = vmul.f32 0.2, %v345_v37  ;;  %v324_v15 = vpop.permute.xlu1 %323 }
 0x216   :  { %v2004_v38 = vadd.f32 %v1407_v16, %v373_v28  ;;  %v2008_v39 = vadd.f32 %v1406_v23, %v372_v29  ;;  %v2021_v51 = vadd.f32 %v1414_v30, %v376_v40  ;;  %v380_v60 = vmax.f32 %v348_v36, %v364_v48 }
 0x217   :  { %v2025_v52 = vadd.f32 %v1410_v31, %v374_v41  ;;  %v2035_v58 = vadd.f32 %v1418_v44, %v378_v46  ;;  %v2039_v59 = vadd.f32 %v1411_v45, %v375_v47  ;;  %v377_v61 = vmax.f32 %v345_v37, %v361_v50  ;;  %v2083_v37 = vld [vmem:[%s2473_s1 + $0x38] sm:$0xff]  }
 0x218   :  { %438 = vmax.xlane.f32.xlu1 %v2004_v38  ;;  %436 = vmax.xlane.f32.xlu0 %v2008_v39  ;;  %v366_v1 = vmul.f32 0.2, %v350_v53  ;;  %v363_v2 = vmul.f32 0.2, %v347_v54  ;;  %v352_v4 = vadd.f32 %v1968_v7, %v319_v57  ;;  %v349_v5 = vadd.f32 %v1968_v7, %v304_v43 }
 0x219   :  { %v1426_v6 = vunpack.c.l.bf16 %v2044_v62  ;;  %v2054_v10 = vadd.f32 %v1422_v55, %v380_v60  ;;  %v2058_v11 = vadd.f32 %v1415_v56, %v377_v61  ;;  %v354_v13 = vadd.f32 %v1968_v7, %v329_v42  ;;  %v334_v40 = vpop.permute.xlu1 %333 }
 0x21a   :  { %v351_v14 = vadd.f32 %v1968_v7, %v314_v63  ;;  %v382_v19 = vmax.f32 %v350_v53, %v366_v1  ;;  %v379_v20 = vmax.f32 %v347_v54, %v363_v2  ;;  %v368_v21 = vmul.f32 0.2, %v352_v4 }
 0x21b   :  { %v365_v22 = vmul.f32 0.2, %v349_v5  ;;  %v1430_v24 = vunpack.c.l.bf16 %v2063_v12  ;;  %v1423_v25 = vunpack.c.h.bf16 %v2017_v49  ;;  %v370_v26 = vmul.f32 0.2, %v354_v13 }
 0x21c   :  { %444 = vmax.xlane.f32.xlu1 %v2021_v51  ;;  %440 = vmax.xlane.f32.xlu0 %v2025_v52  ;;  %v367_v27 = vmul.f32 0.2, %v351_v14  ;;  %v353_v28 = vadd.f32 %v1968_v7, %v324_v15  ;;  %v2074_v29 = vadd.f32 %v1426_v6, %v382_v19  ;;  %v2078_v32 = vadd.f32 %v1419_v8, %v379_v20 }
 0x21d   :  { %v384_v35 = vmax.f32 %v352_v4, %v368_v21  ;;  %v381_v36 = vmax.f32 %v349_v5, %v365_v22  ;;  %v1434_v41 = vunpack.c.l.bf16 %v2083_v37  ;;  %v1427_v42 = vunpack.c.h.bf16 %v2044_v62 }
 0x21e   :  { %v369_v43 = vmul.f32 0.2, %v353_v28  ;;  %v355_v46 = vadd.f32 %v1968_v7, %v334_v40  ;;  %v386_v50 = vmax.f32 %v354_v13, %v370_v26  ;;  %v383_v53 = vmax.f32 %v351_v14, %v367_v27 }
 0x21f   :  { %v2092_v47 = vadd.f32 %v1430_v24, %v384_v35  ;;  %v2096_v48 = vadd.f32 %v1423_v25, %v381_v36  ;;  %v1431_v54 = vunpack.c.h.bf16 %v2063_v12  ;;  %v1435_v2 = vunpack.c.h.bf16 %v2083_v37 }
 0x220   :  { %448 = vmax.xlane.f32.xlu1 %v2035_v58  ;;  %442 = vmax.xlane.f32.xlu0 %v2039_v59  ;;  %v2103_v57 = vadd.f32 %v1434_v41, %v386_v50  ;;  %v2107_v7 = vadd.f32 %v1427_v42, %v383_v53  ;;  %v385_v60 = vmax.f32 %v353_v28, %v369_v43  ;;  %v371_v61 = vmul.f32 0.2, %v355_v46 }
 0x222   :  { %v2113_v63 = vadd.f32 %v1431_v54, %v385_v60  ;;  %v387_v1 = vmax.f32 %v355_v46, %v371_v61 }
 0x224   :  { %452 = vmax.xlane.f32.xlu1 %v2054_v10  ;;  %446 = vmax.xlane.f32.xlu0 %v2058_v11  ;;  %v2119_v4 = vadd.f32 %v1435_v2, %v387_v1 }
 0x228   :  { %456 = vmax.xlane.f32.xlu1 %v2074_v29  ;;  %450 = vmax.xlane.f32.xlu0 %v2078_v32 }
 0x22c   :  { %460 = vmax.xlane.f32.xlu1 %v2092_v47  ;;  %454 = vmax.xlane.f32.xlu0 %v2096_v48 }
 0x230   :  { %464 = vmax.xlane.f32.xlu1 %v2103_v57  ;;  %458 = vmax.xlane.f32.xlu0 %v2107_v7 }
 0x234   :  { %462 = vmax.xlane.f32.xlu0 %v2113_v63 }
 0x238   :  { %466 = vmax.xlane.f32.xlu0 %v2119_v4 }
 0x2a5   :  { %v439_v5 = vpop.xlane.xlu1 %438  ;;  %v437_v13 = vpop.xlane.xlu0 %436 }
 0x2a6   :  { %v469_v14 = vsub.f32 %v2004_v38, %v439_v5  ;;  %v468_v15 = vsub.f32 %v2008_v39, %v437_v13 }
 0x2a8   :  { %v486_v19 = vmul.f32 1.442695, %v469_v14  ;;  %v484_v20 = vmul.f32 1.442695, %v468_v15 }
 0x2a9   :  { %v445_v21 = vpop.xlane.xlu1 %444  ;;  %v441_v22 = vpop.xlane.xlu0 %440 }
 0x2aa   :  { %1714 = vpow2.f32 %v486_v19  ;;  %v472_v26 = vsub.f32 %v2021_v51, %v445_v21  ;;  %v470_v27 = vsub.f32 %v2025_v52, %v441_v22 }
 0x2ab   :  { %1716 = vpow2.f32 %v484_v20 }
 0x2ac   :  { %v488_v28 = vmul.f32 1.442695, %v470_v27  ;;  %v492_v40 = vmul.f32 1.442695, %v472_v26 }
 0x2ad   :  { %v449_v35 = vpop.xlane.xlu1 %448  ;;  %v443_v36 = vpop.xlane.xlu0 %442 }
 0x2ae   :  { %v474_v43 = vsub.f32 %v2035_v58, %v449_v35  ;;  %v471_v38 = vsub.f32 %v2039_v59, %v443_v36  ;;  %1718 = vpow2.f32 %v488_v28 }
 0x2af   :  { %1720 = vpow2.f32 %v492_v40 }
 0x2b0   :  { %v490_v39 = vmul.f32 1.442695, %v471_v38  ;;  %v496_v53 = vmul.f32 1.442695, %v474_v43 }
 0x2b1   :  { %v453_v46 = vpop.xlane.xlu1 %452  ;;  %v447_v50 = vpop.xlane.xlu0 %446 }
 0x2b2   :  { %v476_v60 = vsub.f32 %v2054_v10, %v453_v46  ;;  %v473_v51 = vsub.f32 %v2058_v11, %v447_v50  ;;  %1722 = vpow2.f32 %v490_v39 }
 0x2b3   :  { %1724 = vpow2.f32 %v496_v53 }
 0x2b4   :  { %v2130_v52 = vpop.eup %1714  ;;  %v494_v61 = vmul.f32 1.442695, %v473_v51  ;;  %v500_v59 = vmul.f32 1.442695, %v476_v60 }
 0x2b5   :  { %v2132_v1 = vpop.eup %1716  ;;  %v457_v5 = vpop.xlane.xlu1 %456  ;;  %518 = vadd.xlane.f32.xlu0 %v2130_v52 }
 0x2b6   :  { %v451_v58 = vpop.xlane.xlu0 %450  ;;  %v478_v13 = vsub.f32 %v2074_v29, %v457_v5  ;;  %516 = vadd.xlane.f32.xlu1 %v2132_v1  ;;  %1726 = vpow2.f32 %v494_v61 }
 0x2b7   :  { %v475_v10 = vsub.f32 %v2078_v32, %v451_v58  ;;  %1728 = vpow2.f32 %v500_v59 }
 0x2b8   :  { %v2138_v14 = vpop.eup %1718  ;;  %v504_v20 = vmul.f32 1.442695, %v478_v13 }
 0x2b9   :  { %v498_v11 = vmul.f32 1.442695, %v475_v10  ;;  %v461_v15 = vpop.xlane.xlu1 %460  ;;  %v2143_v29 = vpop.eup %1720  ;;  %v1706_v10 = vld [vmem:[%s2470_s2 + $0x40] sm:$0xff]  }
 0x2ba   :  { %v455_v19 = vpop.xlane.xlu0 %454  ;;  %v480_v21 = vsub.f32 %v2092_v47, %v461_v15  ;;  %520 = vadd.xlane.f32.xlu1 %v2138_v14  ;;  %1609 = vmatprep.subr.bf16.mxu0 %v1706_v10 }
 0x2bb   :  { %v477_v22 = vsub.f32 %v2096_v48, %v455_v19  ;;  %1730 = vpow2.f32 %v498_v11 }
 0x2bc   :  { %v2145_v27 = vpop.eup %1722  ;;  %1732 = vpow2.f32 %v504_v20  ;;  %v508_v35 = vmul.f32 1.442695, %v480_v21 }
 0x2bd   :  { %v502_v26 = vmul.f32 1.442695, %v477_v22  ;;  %v465_v32 = vpop.xlane.xlu1 %464  ;;  %522 = vadd.xlane.f32.xlu0 %v2145_v27  ;;  %v2151_v48 = vpop.eup %1724 }
 0x2be   :  { %v459_v28 = vpop.xlane.xlu0 %458  ;;  %524 = vadd.xlane.f32.xlu1 %v2143_v29  ;;  %v482_v36 = vsub.f32 %v2103_v57, %v465_v32 }
 0x2bf   :  { %v479_v47 = vsub.f32 %v2107_v7, %v459_v28  ;;  %1734 = vpow2.f32 %v502_v26 }
 0x2c0   :  { %v2153_v43 = vpop.eup %1726  ;;  %1736 = vpow2.f32 %v508_v35  ;;  %v512_v46 = vmul.f32 1.442695, %v482_v36 }
 0x2c1   :  { %v506_v40 = vmul.f32 1.442695, %v479_v47  ;;  %526 = vadd.xlane.f32.xlu0 %v2153_v43  ;;  %v2158_v50 = vpop.eup %1728 }
 0x2c2   :  { %v463_v38 = vpop.xlane.xlu0 %462  ;;  %528 = vadd.xlane.f32.xlu1 %v2151_v48 }
 0x2c3   :  { %v481_v39 = vsub.f32 %v2113_v63, %v463_v38  ;;  %1738 = vpow2.f32 %v506_v40 }
 0x2c5   :  { %v510_v7 = vmul.f32 1.442695, %v481_v39  ;;  %v2160_v53 = vpop.eup %1730 }
 0x2c6   :  { %v467_v57 = vpop.xlane.xlu0 %466  ;;  %532 = vadd.xlane.f32.xlu1 %v2158_v50  ;;  %530 = vadd.xlane.f32.xlu0 %v2160_v53  ;;  %v2165_v51 = vpop.eup %1732 }
 0x2c7   :  { %1740 = vpow2.f32 %v510_v7  ;;  %v483_v60 = vsub.f32 %v2119_v4, %v467_v57 }
 0x2c8   :  { %1742 = vpow2.f32 %v512_v46 }
 0x2c9   :  { %v514_v61 = vmul.f32 1.442695, %v483_v60  ;;  %v2167_v63 = vpop.eup %1734 }
 0x2ca   :  { %536 = vadd.xlane.f32.xlu1 %v2165_v51  ;;  %534 = vadd.xlane.f32.xlu0 %v2167_v63  ;;  %v2171_v5 = vpop.eup %1736 }
 0x2cb   :  { %1744 = vpow2.f32 %v514_v61 }
 0x2cd   :  { %v2173_v58 = vpop.eup %1738 }
 0x2ce   :  { %540 = vadd.xlane.f32.xlu1 %v2171_v5  ;;  %538 = vadd.xlane.f32.xlu0 %v2173_v58 }
 0x2d1   :  { %v2177_v4 = vpop.eup %1740 }
 0x2d2   :  { %v2179_v59 = vpop.eup %1742  ;;  %542 = vadd.xlane.f32.xlu0 %v2177_v4 }
 0x2d3   :  { %544 = vadd.xlane.f32.xlu1 %v2179_v59 }
 0x2d5   :  { %v2183_v13 = vpop.eup %1744 }
 0x2d6   :  { %546 = vadd.xlane.f32.xlu0 %v2183_v13 }
 0x342   :  { %v519_v11 = vpop.xlane.xlu0 %518 }
 0x343   :  { %v517_v15 = vpop.xlane.xlu1 %516  ;;  %1746 = vrcp.f32 %v519_v11 }
 0x344   :  { %1748 = vrcp.f32 %v517_v15 }
 0x347   :  { %v521_v19 = vpop.xlane.xlu1 %520 }
 0x348   :  { %1750 = vrcp.f32 %v521_v19 }
 0x34a   :  { %v523_v21 = vpop.xlane.xlu0 %522 }
 0x34b   :  { %v525_v20 = vpop.xlane.xlu1 %524  ;;  %1752 = vrcp.f32 %v523_v21 }
 0x34c   :  { %1754 = vrcp.f32 %v525_v20 }
 0x34d   :  { %v1747_v22 = vpop.eup %1746 }
 0x34e   :  { %v1749_v26 = vpop.eup %1748  ;;  %v565_v32 = vmul.f32 %v1747_v22, %v2130_v52  ;;  %v527_v35 = vpop.xlane.xlu0 %526 }
 0x34f   :  { %v529_v28 = vpop.xlane.xlu1 %528  ;;  %v564_v47 = vmul.f32 %v1749_v26, %v2132_v1  ;;  %1756 = vrcp.f32 %v527_v35  ;;  %v1707_v1 = vld [vmem:[%s2470_s2 + $0x48] sm:$0xff]  }
 0x350   :  { %1758 = vrcp.f32 %v529_v28 }
 0x351   :  { %v580_v36 = vpack.c.bf16 %v565_v32, %v564_v47 }
 0x352   :  { %v1751_v39 = vpop.eup %1750 }
 0x353   :  { %v533_v40 = vpop.xlane.xlu1 %532  ;;  %1593 = vmatprep.mubr.bf16.mxu0 %v580_v36  ;;  %v531_v38 = vpop.xlane.xlu0 %530  ;;  %v566_v60 = vmul.f32 %v1751_v39, %v2138_v14 }
 0x354   :  { %1760 = vrcp.f32 %v531_v38 }
 0x355   :  { %v1753_v46 = vpop.eup %1752  ;;  %1762 = vrcp.f32 %v533_v40 }
 0x356   :  { %v567_v52 = vmul.f32 %v1753_v46, %v2145_v27  ;;  %v1755_v61 = vpop.eup %1754  ;;  %v1708_v27 = vld [vmem:[%s2470_s2 + $0x50] sm:$0xff]  }
 0x357   :  { %v537_v7 = vpop.xlane.xlu1 %536  ;;  %v535_v57 = vpop.xlane.xlu0 %534  ;;  %v568_v21 = vmul.f32 %v1755_v61, %v2143_v29 }
 0x358   :  { %1764 = vrcp.f32 %v535_v57  ;;  %v581_v11 = vpack.c.bf16 %v567_v52, %v566_v60 }
 0x359   :  { %v1757_v15 = vpop.eup %1756  ;;  %1766 = vrcp.f32 %v537_v7  ;;  %v1710_v7 = vld [vmem:[%s2470_s2 + $0x60] sm:$0xff]  }
 0x35a   :  { %1594 = vmatmul.mubr.bf16.vlgmr.msra.gmra.mrb[16].mxu0 %v581_v11  ;;  %v569_v22 = vmul.f32 %v1757_v15, %v2153_v43  ;;  %v1759_v26 = vpop.eup %1758 }
 0x35b   :  { %v541_v19 = vpop.xlane.xlu1 %540  ;;  %v539_v20 = vpop.xlane.xlu0 %538  ;;  %1610 = vmatpush3.bf16.msra.mxu0 %v1706_v10  ;;  %v570_v47 = vmul.f32 %v1759_v26, %v2151_v48  ;;  %v1709_v10 = vld [vmem:[%s2470_s2 + $0x58] sm:$0xff]   ;;  %v1712_v26 = vld [vmem:[%s2470_s2 + $0x70] sm:$0xff]  }
 0x35c   :  { %1768 = vrcp.f32 %v539_v20  ;;  %v582_v14 = vpack.c.bf16 %v569_v22, %v568_v21  ;;  %1611 = vmatprep.subr.bf16.mxu0 %v1707_v1 }
 0x35d   :  { %1770 = vrcp.f32 %v541_v19 }
 0x35e   :  { %v1761_v32 = vpop.eup %1760  ;;  %1597 = vmatprep.mubr.bf16.mxu0 %v582_v14 }
 0x35f   :  { %v543_v35 = vpop.xlane.xlu0 %542  ;;  %v571_v29 = vmul.f32 %v1761_v32, %v2160_v53  ;;  %v1763_v36 = vpop.eup %1762  ;;  %1612 = vmatpush3.bf16.msra.mxu0 %v1707_v1 }
 0x360   :  { %v545_v28 = vpop.xlane.xlu1 %544  ;;  %1772 = vrcp.f32 %v543_v35  ;;  %1613 = vmatprep.subr.bf16.mxu0 %v1708_v27  ;;  %v572_v39 = vmul.f32 %v1763_v36, %v2158_v50  ;;  %v1711_v50 = vld [vmem:[%s2470_s2 + $0x68] sm:$0xff]  }
 0x361   :  { %1774 = vrcp.f32 %v545_v28  ;;  %v583_v43 = vpack.c.bf16 %v571_v29, %v570_v47 }
 0x362   :  { %v1765_v40 = vpop.eup %1764 }
 0x363   :  { %v547_v38 = vpop.xlane.xlu0 %546  ;;  %1598 = vmatmul.mubr.bf16.gmra.mrb[20].mxu0 %v583_v43  ;;  %v573_v48 = vmul.f32 %v1765_v40, %v2167_v63  ;;  %v1767_v46 = vpop.eup %1766 }
 0x364   :  { %1776 = vrcp.f32 %v547_v38  ;;  %1614 = vmatpush3.bf16.msra.mxu0 %v1708_v27  ;;  %v574_v60 = vmul.f32 %v1767_v46, %v2165_v51 }
 0x365   :  { %v584_v53 = vpack.c.bf16 %v573_v48, %v572_v39  ;;  %1615 = vmatprep.subr.bf16.mxu0 %v1709_v10 }
 0x366   :  { %v1769_v57 = vpop.eup %1768 }
 0x367   :  { %1601 = vmatprep.mubr.bf16.mxu0 %v584_v53  ;;  %v575_v52 = vmul.f32 %v1769_v57, %v2173_v58  ;;  %v1771_v61 = vpop.eup %1770 }
 0x368   :  { %1616 = vmatpush3.bf16.msra.mxu0 %v1709_v10  ;;  %v576_v15 = vmul.f32 %v1771_v61, %v2171_v5  ;;  %v1713_v5 = vld [vmem:[%s2470_s2 + $0x78] sm:$0xff]  }
 0x369   :  { %v585_v11 = vpack.c.bf16 %v575_v52, %v574_v60  ;;  %1617 = vmatprep.subr.bf16.mxu0 %v1710_v7 }
 0x36a   :  { %v1773_v63 = vpop.eup %1772 }
 0x36b   :  { %v1775_v1 = vpop.eup %1774  ;;  %1602 = vmatmul.mubr.bf16.gmra.mrb[24].mxu0 %v585_v11  ;;  %v577_v19 = vmul.f32 %v1773_v63, %v2177_v4  ;;  %v1376_v4 = vld [vmem:[%s2474_s4] ss:$0 sm:$0xff] }
 0x36c   :  { %1618 = vmatpush3.bf16.msra.mxu0 %v1710_v7  ;;  %v578_v58 = vmul.f32 %v1775_v1, %v2179_v59 }
 0x36d   :  { %v586_v51 = vpack.c.bf16 %v577_v19, %v576_v15  ;;  %1619 = vmatprep.subr.bf16.mxu0 %v1711_v50 }
 0x36e   :  { %v1777_v20 = vpop.eup %1776 }
 0x36f   :  { %v579_v21 = vmul.f32 %v1777_v20, %v2183_v13  ;;  %1605 = vmatprep.mubr.bf16.mxu0 %v586_v51 }
 0x370   :  { %1620 = vmatpush3.bf16.msra.mxu0 %v1711_v50 }
 0x371   :  { %v587_v22 = vpack.c.bf16 %v579_v21, %v578_v58  ;;  %1621 = vmatprep.subr.bf16.mxu0 %v1712_v26 }
 0x373   :  { %1606 = vmatmul.mubr.bf16.gmra.mrb[28].mxu0 %v587_v22 }
 0x374   :  { %1622 = vmatpush3.bf16.msra.mxu0 %v1712_v26 }
 0x375   :  { %1623 = vmatprep.subr.bf16.mxu0 %v1713_v5 }
 0x378   :  { %1624 = vmatpush3.bf16.msra.mxu0 %v1713_v5 }
 0x42d   :  { %v1595_v59 = vpop.f32.mrb[16].mxu0 }
 0x42e   :  { %v637_v13 = vadd.f32 %v1595_v59, %v1376_v4  ;;  %v628_v14 = vpop.f32.mrb[17].mxu0 }
 0x42f   :  { %v629_v27 = vadd.f32 %v1376_v4, %v628_v14  ;;  %v1596_v32 = vpop.f32.mrb[18].mxu0 }
 0x430   :  { %v640_v28 = vadd.f32 %v1596_v32, %v1376_v4  ;;  %v631_v35 = vpop.f32.mrb[19].mxu0  ;;  %v693_v29 = vmax.f32 %v637_v13, 0.0 }
 0x431   :  { %v632_v47 = vadd.f32 %v1376_v4, %v631_v35  ;;  %v691_v43 = vmax.f32 %v629_v27, 0.0 }
 0x432   :  { %v694_v36 = vmax.f32 %v640_v28, 0.0 }
 0x433   :  { %v692_v10 = vmax.f32 %v632_v47, 0.0 }
 0x434   :  { %v729_v40 = vpack.c.bf16 %v694_v36, %v693_v29 }
 0x435   :  { %v728_v38 = vpack.c.bf16 %v692_v10, %v691_v43 }
 0x436   :  { %v1599_v39 = vpop.f32.mrb[20].mxu0 }
 0x437   :  { %v653_v48 = vadd.f32 %v1599_v39, %v1376_v4  ;;  %v644_v46 = vpop.f32.mrb[21].mxu0  ;;  %1625 = vmatprep.mubr.bf16.mxu0 %v728_v38 }
 0x438   :  { %v645_v53 = vadd.f32 %v1376_v4, %v644_v46  ;;  %v1600_v7 = vpop.f32.mrb[22].mxu0  ;;  %1626 = vmatmul.mubr.bf16.vlgmr.msra.gmra.mrb[32].mxu0 %v729_v40 }
 0x439   :  { %v656_v57 = vadd.f32 %v1600_v7, %v1376_v4  ;;  %v647_v60 = vpop.f32.mrb[23].mxu0  ;;  %v697_v61 = vmax.f32 %v653_v48, 0.0 }
 0x43a   :  { %v648_v52 = vadd.f32 %v1376_v4, %v647_v60  ;;  %v695_v50 = vmax.f32 %v645_v53, 0.0 }
 0x43b   :  { %v698_v11 = vmax.f32 %v656_v57, 0.0 }
 0x43c   :  { %v696_v63 = vmax.f32 %v648_v52, 0.0 }
 0x43d   :  { %v731_v1 = vpack.c.bf16 %v698_v11, %v697_v61 }
 0x43e   :  { %v730_v15 = vpack.c.bf16 %v696_v63, %v695_v50  ;;  %v1603_v19 = vpop.f32.mrb[24].mxu0 }
 0x43f   :  { %v669_v20 = vadd.f32 %v1603_v19, %v1376_v4  ;;  %v660_v51 = vpop.f32.mrb[25].mxu0 }
 0x440   :  { %v661_v58 = vadd.f32 %v1376_v4, %v660_v51  ;;  %v1604_v21 = vpop.f32.mrb[26].mxu0  ;;  %1629 = vmatprep.mubr.bf16.mxu0 %v730_v15 }
 0x441   :  { %v672_v22 = vadd.f32 %v1604_v21, %v1376_v4  ;;  %v663_v26 = vpop.f32.mrb[27].mxu0  ;;  %1630 = vmatmul.mubr.bf16.gmra.mrb[36].mxu0 %v731_v1  ;;  %v701_v59 = vmax.f32 %v669_v20, 0.0 }
 0x442   :  { %v664_v5 = vadd.f32 %v1376_v4, %v663_v26  ;;  %v699_v14 = vmax.f32 %v661_v58, 0.0 }
 0x443   :  { %v702_v13 = vmax.f32 %v672_v22, 0.0 }
 0x444   :  { %v700_v27 = vmax.f32 %v664_v5, 0.0 }
 0x445   :  { %v733_v32 = vpack.c.bf16 %v702_v13, %v701_v59 }
 0x446   :  { %v732_v28 = vpack.c.bf16 %v700_v27, %v699_v14  ;;  %v1607_v35 = vpop.f32.mrb[28].mxu0 }
 0x447   :  { %v685_v47 = vadd.f32 %v1607_v35, %v1376_v4  ;;  %v676_v29 = vpop.f32.mrb[29].mxu0 }
 0x448   :  { %v677_v36 = vadd.f32 %v1376_v4, %v676_v29  ;;  %v1608_v43 = vpop.f32.mrb[30].mxu0  ;;  %1633 = vmatprep.mubr.bf16.mxu0 %v732_v28 }
 0x449   :  { %v688_v10 = vadd.f32 %v1608_v43, %v1376_v4  ;;  %v679_v40 = vpop.f32.mrb[31].mxu0  ;;  %1634 = vmatmul.mubr.bf16.gmra.mrb[40].mxu0 %v733_v32  ;;  %v705_v39 = vmax.f32 %v685_v47, 0.0  ;;  %v1393_v47 = vld [vmem:[%s2472_s3 + $0x1] sm:$0x1] }
 0x44a   :  { %v680_v38 = vadd.f32 %v1376_v4, %v679_v40  ;;  %v703_v46 = vmax.f32 %v677_v36, 0.0 }
 0x44b   :  { %v706_v48 = vmax.f32 %v688_v10, 0.0 }
 0x44c   :  { %v704_v53 = vmax.f32 %v680_v38, 0.0 }
 0x44d   :  { %v735_v7 = vpack.c.bf16 %v706_v48, %v705_v39 }
 0x44e   :  { %v734_v57 = vpack.c.bf16 %v704_v53, %v703_v46 }
 0x450   :  { %1637 = vmatprep.mubr.bf16.mxu0 %v734_v57 }
 0x451   :  { %1638 = vmatmul.mubr.bf16.gmra.mrb[44].mxu0 %v735_v7 }
 0x50b   :  { %v1627_v60 = vpop.f32.mrb[32].mxu0 }
 0x50c   :  { %941 = vperm.xlu1 %1697, %v1627_v60   ;;  %v818_v52 = vpop.f32.mrb[33].mxu0 }
 0x50d   :  { %v1628_v61 = vpop.f32.mrb[34].mxu0 }
 0x50e   :  { %v882_v11 = vpack.c.bf16 %v1628_v61, %v1627_v60  ;;  %v821_v50 = vpop.f32.mrb[35].mxu0 }
 0x50f   :  { %v881_v63 = vpack.c.bf16 %v821_v50, %v818_v52  ;;  %936 = vperm.xlu0 %1696, %v821_v50  }
 0x510   :  { %931 = vperm.xlu1 %1697, %v818_v52  }
 0x511   :  { %1642 = vmatpush3.bf16.xpose.msra.mxu1 %v881_v63  ;;  %1661 = vmatprep.subr.bf16.mxu0 %v881_v63 }
 0x512   :  { %1662 = vmatpush3.bf16.msra.mxu0 %v881_v63  ;;  %1643 = vmatprep.subr.bf16.mxu1 %v1843_v33 }
 0x513   :  { %1663 = vmatprep.subr.bf16.mxu0 %v882_v11 }
 0x514   :  { %v1631_v4 = vpop.f32.mrb[36].mxu0  ;;  %946 = vperm.xlu1 %1697, %v1628_v61  }
 0x515   :  { %961 = vperm.xlu0 %1696, %v1631_v4   ;;  %v834_v1 = vpop.f32.mrb[37].mxu0 }
 0x516   :  { %v1632_v15 = vpop.f32.mrb[38].mxu0  ;;  %1664 = vmatpush3.bf16.msra.mxu0 %v882_v11 }
 0x517   :  { %v884_v19 = vpack.c.bf16 %v1632_v15, %v1631_v4  ;;  %v837_v20 = vpop.f32.mrb[39].mxu0 }
 0x518   :  { %v883_v51 = vpack.c.bf16 %v837_v20, %v834_v1  ;;  %956 = vperm.xlu1 %1697, %v837_v20  }
 0x519   :  { %951 = vperm.xlu0 %1696, %v834_v1   ;;  %1644 = vmatpush3.bf16.xpose.msra.mxu1 %v882_v11 }
 0x51a   :  { %1665 = vmatprep.subr.bf16.mxu0 %v883_v51  ;;  %1645 = vmatprep.subr.bf16.mxu1 %v1843_v33 }
 0x51b   :  { %1666 = vmatpush3.bf16.msra.mxu0 %v883_v51 }
 0x51c   :  { %v1635_v58 = vpop.f32.mrb[40].mxu0  ;;  %1667 = vmatprep.subr.bf16.mxu0 %v884_v19  ;;  %966 = vperm.xlu1 %1697, %v1632_v15  }
 0x51d   :  { %981 = vperm.xlu0 %1696, %v1635_v58   ;;  %v850_v21 = vpop.f32.mrb[41].mxu0 }
 0x51e   :  { %v1636_v22 = vpop.f32.mrb[42].mxu0 }
 0x51f   :  { %v886_v26 = vpack.c.bf16 %v1636_v22, %v1635_v58  ;;  %v853_v5 = vpop.f32.mrb[43].mxu0  ;;  %1668 = vmatpush3.bf16.msra.mxu0 %v884_v19 }
 0x520   :  { %v885_v59 = vpack.c.bf16 %v853_v5, %v850_v21  ;;  %976 = vperm.xlu1 %1697, %v853_v5  }
 0x521   :  { %971 = vperm.xlu0 %1696, %v850_v21   ;;  %1646 = vmatpush3.bf16.xpose.msra.mxu1 %v883_v51 }
 0x522   :  { %1669 = vmatprep.subr.bf16.mxu0 %v885_v59  ;;  %1647 = vmatprep.subr.bf16.mxu1 %v1843_v33 }
 0x523   :  { %1670 = vmatpush3.bf16.msra.mxu0 %v885_v59 }
 0x524   :  { %v1639_v13 = vpop.f32.mrb[44].mxu0  ;;  %1671 = vmatprep.subr.bf16.mxu0 %v886_v26  ;;  %986 = vperm.xlu1 %1697, %v1636_v22  }
 0x525   :  { %1001 = vperm.xlu0 %1696, %v1639_v13   ;;  %v866_v14 = vpop.f32.mrb[45].mxu0 }
 0x526   :  { %v1640_v27 = vpop.f32.mrb[46].mxu0 }
 0x527   :  { %v888_v32 = vpack.c.bf16 %v1640_v27, %v1639_v13  ;;  %v869_v28 = vpop.f32.mrb[47].mxu0  ;;  %1672 = vmatpush3.bf16.msra.mxu0 %v886_v26 }
 0x528   :  { %v887_v35 = vpack.c.bf16 %v869_v28, %v866_v14  ;;  %996 = vperm.xlu1 %1697, %v869_v28  }
 0x529   :  { %991 = vperm.xlu0 %1696, %v866_v14   ;;  %1648 = vmatpush3.bf16.xpose.msra.mxu1 %v884_v19 }
 0x52a   :  { %1673 = vmatprep.subr.bf16.mxu0 %v887_v35  ;;  %1649 = vmatprep.subr.bf16.mxu1 %v1843_v33 }
 0x52b   :  { %1674 = vmatpush3.bf16.msra.mxu0 %v887_v35 }
 0x52c   :  { %1675 = vmatprep.subr.bf16.mxu0 %v888_v32  ;;  %1006 = vperm.xlu1 %1697, %v1640_v27  }
 0x52f   :  { %1676 = vmatpush3.bf16.msra.mxu0 %v888_v32 }
 0x531   :  { %1650 = vmatpush3.bf16.xpose.msra.mxu1 %v885_v59 }
 0x532   :  { %1651 = vmatprep.subr.bf16.mxu1 %v1843_v33 }
 0x539   :  { %1652 = vmatpush3.bf16.xpose.msra.mxu1 %v886_v26 }
 0x53a   :  { %1653 = vmatprep.subr.bf16.mxu1 %v1843_v33 }
 0x541   :  { %1654 = vmatpush3.bf16.xpose.msra.mxu1 %v887_v35 }
 0x542   :  { %1655 = vmatprep.subr.bf16.mxu1 %v1843_v33 }
 0x549   :  { %1656 = vmatpush3.bf16.xpose.msra.mxu1 %v888_v32 }
 0x550   :  { %1658 = vmatmul.mubr.bf16.vlgmr.msra.gmra.mrb[4].mxu1 %v1393_v47 }
 0x58b   :  { %v942_v29 = vpop.permute.xlu1 %941 }
 0x58e   :  { %v937_v36 = vpop.permute.xlu0 %936 }
 0x58f   :  { %v932_v43 = vpop.permute.xlu1 %931 }
 0x593   :  { %v947_v40 = vpop.permute.xlu1 %946 }
 0x594   :  { %v962_v10 = vpop.permute.xlu0 %961 }
 0x597   :  { %v957_v39 = vpop.permute.xlu1 %956 }
 0x598   :  { %v952_v38 = vpop.permute.xlu0 %951 }
 0x59b   :  { %v967_v57 = vpop.permute.xlu1 %966 }
 0x59c   :  { %v982_v48 = vpop.permute.xlu0 %981 }
 0x59f   :  { %v977_v5 = vpop.permute.xlu1 %976 }
 0x5a0   :  { %v972_v63 = vpop.permute.xlu0 %971 }
 0x5a4   :  { %v1002_v32 = vpop.permute.xlu0 %1001 }
 0x623   :  { %v923_v46 = vpop.f32.mrb[4].mxu1 }
 0x624   :  { %v2241_v53 = vrot.slane %v923_v46, %v338_v3  ;;  %v1659_v33 = vpop.f32.mrb[5].mxu1 }
 0x625   :  { %v926_v7 = vpop.f32.mrb[6].mxu1 }
 0x626   :  { %v1660_v60 = vpop.f32.mrb[7].mxu1  ;;  %v1014_v52 = vadd.f32 %v2241_v53, %v937_v36  ;;  %v1013_v61 = vadd.f32 %v2241_v53, %v932_v43  ;;  %v1017_v11 = vadd.f32 %v2241_v53, %v952_v38  ;;  %v1015_v50 = vadd.f32 %v2241_v53, %v942_v29  ;;  %v987_v43 = vpop.permute.xlu1 %986 }
 0x627   :  { %v1019_v4 = vadd.f32 %v2241_v53, %v962_v10  ;;  %v1016_v1 = vadd.f32 %v2241_v53, %v947_v40  ;;  %v1021_v22 = vadd.f32 %v2241_v53, %v972_v63  ;;  %v1018_v26 = vadd.f32 %v2241_v53, %v957_v39  ;;  %v992_v10 = vpop.permute.xlu0 %991 }
 0x628   :  { %v1030_v0 = vmul.f32 0.2, %v1014_v52  ;;  %v1029_v3 = vmul.f32 0.2, %v1013_v61  ;;  %v1033_v15 = vmul.f32 0.2, %v1017_v11  ;;  %v1025_v46 = vadd.f32 %v2241_v53, %v992_v10 }
 0x629   :  { %v1031_v19 = vmul.f32 0.2, %v1015_v50  ;;  %v1035_v58 = vmul.f32 0.2, %v1019_v4  ;;  %v1032_v21 = vmul.f32 0.2, %v1016_v1  ;;  %v1022_v33 = vadd.f32 %v2241_v53, %v977_v5 }
 0x62a   :  { %v1046_v20 = vmax.f32 %v1014_v52, %v1030_v0  ;;  %v1045_v51 = vmax.f32 %v1013_v61, %v1029_v3  ;;  %v1049_v14 = vmax.f32 %v1017_v11, %v1033_v15  ;;  %v1037_v47 = vmul.f32 0.2, %v1021_v22 }
 0x62b   :  { %v1047_v27 = vmax.f32 %v1015_v50, %v1031_v19  ;;  %v1051_v28 = vmax.f32 %v1019_v4, %v1035_v58  ;;  %v1048_v35 = vmax.f32 %v1016_v1, %v1032_v21  ;;  %v1034_v29 = vmul.f32 0.2, %v1018_v26 }
 0x62c   :  { %v2253_v59 = vadd.f32 %v1407_v16, %v1046_v20  ;;  %v2257_v13 = vadd.f32 %v1406_v23, %v1045_v51  ;;  %v2263_v36 = vadd.f32 %v1414_v30, %v1049_v14  ;;  %v1023_v16 = vadd.f32 %v2241_v53, %v982_v48 }
 0x62d   :  { %v2267_v9 = vadd.f32 %v1410_v31, %v1047_v27  ;;  %v1020_v23 = vadd.f32 %v2241_v53, %v967_v57  ;;  %v2275_v40 = vadd.f32 %v1418_v44, %v1051_v28  ;;  %v2279_v30 = vadd.f32 %v1411_v45, %v1048_v35  ;;  %v997_v57 = vpop.permute.xlu1 %996 }
 0x62e   :  { %1079 = vmax.xlane.f32.xlu1 %v2253_v59  ;;  %1077 = vmax.xlane.f32.xlu0 %v2257_v13  ;;  %v1053_v31 = vmax.f32 %v1021_v22, %v1037_v47  ;;  %v1050_v38 = vmax.f32 %v1018_v26, %v1034_v29  ;;  %v1039_v39 = vmul.f32 0.2, %v1023_v16  ;;  %v1027_v45 = vadd.f32 %v2241_v53, %v1002_v32 }
 0x62f   :  { %v1036_v48 = vmul.f32 0.2, %v1020_v23  ;;  %v1024_v7 = vadd.f32 %v2241_v53, %v987_v43  ;;  %v1041_v61 = vmul.f32 0.2, %v1025_v46  ;;  %v1038_v11 = vmul.f32 0.2, %v1022_v33 }
 0x630   :  { %v2287_v44 = vadd.f32 %v1422_v55, %v1053_v31  ;;  %v2291_v18 = vadd.f32 %v1415_v56, %v1050_v38  ;;  %v1055_v60 = vmax.f32 %v1023_v16, %v1039_v39  ;;  %v1043_v50 = vmul.f32 0.2, %v1027_v45 }
 0x631   :  { %v1052_v52 = vmax.f32 %v1020_v23, %v1036_v48  ;;  %v1040_v55 = vmul.f32 0.2, %v1024_v7  ;;  %v1026_v63 = vadd.f32 %v2241_v53, %v997_v57  ;;  %v1057_v4 = vmax.f32 %v1025_v46, %v1041_v61  ;;  %v1007_v0 = vpop.permute.xlu1 %1006 }
 0x632   :  { %1085 = vmax.xlane.f32.xlu1 %v2263_v36  ;;  %1081 = vmax.xlane.f32.xlu0 %v2267_v9  ;;  %v2300_v17 = vadd.f32 %v1426_v6, %v1055_v60  ;;  %v1054_v1 = vmax.f32 %v1022_v33, %v1038_v11  ;;  %v1028_v15 = vadd.f32 %v2241_v53, %v1007_v0 }
 0x633   :  { %v2304_v56 = vadd.f32 %v1419_v8, %v1052_v52  ;;  %v1042_v3 = vmul.f32 0.2, %v1026_v63  ;;  %v2311_v19 = vadd.f32 %v1430_v24, %v1057_v4  ;;  %v1059_v34 = vmax.f32 %v1027_v45, %v1043_v50 }
 0x634   :  { %v2315_v6 = vadd.f32 %v1423_v25, %v1054_v1  ;;  %v1056_v8 = vmax.f32 %v1024_v7, %v1040_v55  ;;  %v1044_v51 = vmul.f32 0.2, %v1028_v15 }
 0x635   :  { %v2321_v20 = vadd.f32 %v1434_v41, %v1059_v34  ;;  %v1058_v24 = vmax.f32 %v1026_v63, %v1042_v3 }
 0x636   :  { %1089 = vmax.xlane.f32.xlu1 %v2275_v40  ;;  %1083 = vmax.xlane.f32.xlu0 %v2279_v30  ;;  %v2325_v53 = vadd.f32 %v1427_v42, %v1056_v8  ;;  %v1060_v25 = vmax.f32 %v1028_v15, %v1044_v51 }
 0x637   :  { %v2331_v49 = vadd.f32 %v1431_v54, %v1058_v24 }
 0x638   :  { %v2336_v41 = vadd.f32 %v1435_v2, %v1060_v25 }
 0x63a   :  { %1093 = vmax.xlane.f32.xlu1 %v2287_v44  ;;  %1087 = vmax.xlane.f32.xlu0 %v2291_v18 }
 0x63e   :  { %1097 = vmax.xlane.f32.xlu1 %v2300_v17  ;;  %1091 = vmax.xlane.f32.xlu0 %v2304_v56 }
 0x642   :  { %1101 = vmax.xlane.f32.xlu1 %v2311_v19  ;;  %1095 = vmax.xlane.f32.xlu0 %v2315_v6 }
 0x646   :  { %1105 = vmax.xlane.f32.xlu1 %v2321_v20  ;;  %1099 = vmax.xlane.f32.xlu0 %v2325_v53 }
 0x64a   :  { %1103 = vmax.xlane.f32.xlu0 %v2331_v49 }
 0x64e   :  { %1107 = vmax.xlane.f32.xlu0 %v2336_v41 }
 0x6bb   :  { %v1080_v62 = vpop.xlane.xlu1 %1079  ;;  %v1078_v42 = vpop.xlane.xlu0 %1077 }
 0x6bc   :  { %v1110_v58 = vsub.f32 %v2253_v59, %v1080_v62  ;;  %v1109_v21 = vsub.f32 %v2257_v13, %v1078_v42 }
 0x6be   :  { %v1127_v22 = vmul.f32 1.442695, %v1110_v58  ;;  %v1125_v26 = vmul.f32 1.442695, %v1109_v21 }
 0x6bf   :  { %v1086_v12 = vpop.xlane.xlu1 %1085  ;;  %v1082_v54 = vpop.xlane.xlu0 %1081 }
 0x6c0   :  { %1778 = vpow2.f32 %v1127_v22  ;;  %v1113_v5 = vsub.f32 %v2263_v36, %v1086_v12  ;;  %v1111_v14 = vsub.f32 %v2267_v9, %v1082_v54 }
 0x6c1   :  { %1780 = vpow2.f32 %v1125_v26 }
 0x6c2   :  { %v1129_v37 = vmul.f32 1.442695, %v1111_v14  ;;  %v1133_v32 = vmul.f32 1.442695, %v1113_v5 }
 0x6c3   :  { %v1090_v2 = vpop.xlane.xlu1 %1089  ;;  %v1084_v27 = vpop.xlane.xlu0 %1083 }
 0x6c4   :  { %v1115_v28 = vsub.f32 %v2275_v40, %v1090_v2  ;;  %v1112_v59 = vsub.f32 %v2279_v30, %v1084_v27  ;;  %1782 = vpow2.f32 %v1129_v37 }
 0x6c5   :  { %1784 = vpow2.f32 %v1133_v32 }
 0x6c6   :  { %v1131_v13 = vmul.f32 1.442695, %v1112_v59  ;;  %v1137_v29 = vmul.f32 1.442695, %v1115_v28 }
 0x6c7   :  { %v1094_v35 = vpop.xlane.xlu1 %1093  ;;  %v1088_v47 = vpop.xlane.xlu0 %1087 }
 0x6c8   :  { %v1117_v16 = vsub.f32 %v2287_v44, %v1094_v35  ;;  %v1114_v36 = vsub.f32 %v2291_v18, %v1088_v47  ;;  %1786 = vpow2.f32 %v1131_v13 }
 0x6c9   :  { %1788 = vpow2.f32 %v1137_v29 }
 0x6ca   :  { %v2347_v9 = vpop.eup %1778  ;;  %v1135_v23 = vmul.f32 1.442695, %v1114_v36  ;;  %v1141_v30 = vmul.f32 1.442695, %v1117_v16 }
 0x6cb   :  { %v2349_v43 = vpop.eup %1780  ;;  %v1098_v10 = vpop.xlane.xlu1 %1097  ;;  %1159 = vadd.xlane.f32.xlu0 %v2347_v9 }
 0x6cc   :  { %v1092_v40 = vpop.xlane.xlu0 %1091  ;;  %v1119_v31 = vsub.f32 %v2300_v17, %v1098_v10  ;;  %1157 = vadd.xlane.f32.xlu1 %v2349_v43  ;;  %1790 = vpow2.f32 %v1135_v23 }
 0x6cd   :  { %v1116_v38 = vsub.f32 %v2304_v56, %v1092_v40  ;;  %1792 = vpow2.f32 %v1141_v30 }
 0x6ce   :  { %v2355_v48 = vpop.eup %1782  ;;  %v1145_v44 = vmul.f32 1.442695, %v1119_v31 }
 0x6cf   :  { %v1139_v39 = vmul.f32 1.442695, %v1116_v38  ;;  %v1102_v46 = vpop.xlane.xlu1 %1101  ;;  %v2360_v7 = vpop.eup %1784 }
 0x6d0   :  { %v1096_v33 = vpop.xlane.xlu0 %1095  ;;  %v1121_v18 = vsub.f32 %v2311_v19, %v1102_v46  ;;  %1161 = vadd.xlane.f32.xlu1 %v2355_v48 }
 0x6d1   :  { %v1118_v45 = vsub.f32 %v2315_v6, %v1096_v33  ;;  %1794 = vpow2.f32 %v1139_v39 }
 0x6d2   :  { %v2362_v60 = vpop.eup %1786  ;;  %1796 = vpow2.f32 %v1145_v44  ;;  %v1149_v11 = vmul.f32 1.442695, %v1121_v18 }
 0x6d3   :  { %v1143_v57 = vmul.f32 1.442695, %v1118_v45  ;;  %v1106_v52 = vpop.xlane.xlu1 %1105  ;;  %1163 = vadd.xlane.f32.xlu0 %v2362_v60  ;;  %v2368_v63 = vpop.eup %1788 }
 0x6d4   :  { %v1100_v61 = vpop.xlane.xlu0 %1099  ;;  %1165 = vadd.xlane.f32.xlu1 %v2360_v7  ;;  %v1123_v55 = vsub.f32 %v2321_v20, %v1106_v52 }
 0x6d5   :  { %v1120_v50 = vsub.f32 %v2325_v53, %v1100_v61  ;;  %1798 = vpow2.f32 %v1143_v57 }
 0x6d6   :  { %v2370_v56 = vpop.eup %1790  ;;  %1800 = vpow2.f32 %v1149_v11  ;;  %v1153_v0 = vmul.f32 1.442695, %v1123_v55 }
 0x6d7   :  { %v1147_v17 = vmul.f32 1.442695, %v1120_v50  ;;  %1167 = vadd.xlane.f32.xlu0 %v2370_v56  ;;  %v2375_v3 = vpop.eup %1792 }
 0x6d8   :  { %v1104_v4 = vpop.xlane.xlu0 %1103  ;;  %1169 = vadd.xlane.f32.xlu1 %v2368_v63 }
 0x6d9   :  { %v1122_v1 = vsub.f32 %v2331_v49, %v1104_v4  ;;  %1802 = vpow2.f32 %v1147_v17 }
 0x6db   :  { %v1151_v15 = vmul.f32 1.442695, %v1122_v1  ;;  %v2377_v19 = vpop.eup %1794 }
 0x6dc   :  { %v1108_v6 = vpop.xlane.xlu0 %1107  ;;  %1173 = vadd.xlane.f32.xlu1 %v2375_v3  ;;  %1171 = vadd.xlane.f32.xlu0 %v2377_v19  ;;  %v2382_v8 = vpop.eup %1796 }
 0x6dd   :  { %1804 = vpow2.f32 %v1151_v15  ;;  %v1124_v34 = vsub.f32 %v2336_v41, %v1108_v6 }
 0x6de   :  { %1806 = vpow2.f32 %v1153_v0 }
 0x6df   :  { %v1155_v20 = vmul.f32 1.442695, %v1124_v34  ;;  %v2384_v53 = vpop.eup %1798 }
 0x6e0   :  { %1177 = vadd.xlane.f32.xlu1 %v2382_v8  ;;  %1175 = vadd.xlane.f32.xlu0 %v2384_v53  ;;  %v2388_v24 = vpop.eup %1800 }
 0x6e1   :  { %1808 = vpow2.f32 %v1155_v20 }
 0x6e3   :  { %v2390_v51 = vpop.eup %1802 }
 0x6e4   :  { %1181 = vadd.xlane.f32.xlu1 %v2388_v24  ;;  %1179 = vadd.xlane.f32.xlu0 %v2390_v51 }
 0x6e7   :  { %v2394_v49 = vpop.eup %1804 }
 0x6e8   :  { %v2396_v25 = vpop.eup %1806  ;;  %1183 = vadd.xlane.f32.xlu0 %v2394_v49 }
 0x6e9   :  { %1185 = vadd.xlane.f32.xlu1 %v2396_v25 }
 0x6eb   :  { %v2400_v41 = vpop.eup %1808 }
 0x6ec   :  { %1187 = vadd.xlane.f32.xlu0 %v2400_v41 }
 0x758   :  { %v1160_v62 = vpop.xlane.xlu0 %1159 }
 0x759   :  { %v1158_v42 = vpop.xlane.xlu1 %1157  ;;  %1810 = vrcp.f32 %v1160_v62 }
 0x75a   :  { %1812 = vrcp.f32 %v1158_v42 }
 0x75d   :  { %v1162_v58 = vpop.xlane.xlu1 %1161 }
 0x75e   :  { %1814 = vrcp.f32 %v1162_v58 }
 0x760   :  { %v1164_v22 = vpop.xlane.xlu0 %1163 }
 0x761   :  { %v1166_v21 = vpop.xlane.xlu1 %1165  ;;  %1816 = vrcp.f32 %v1164_v22 }
 0x762   :  { %1818 = vrcp.f32 %v1166_v21 }
 0x763   :  { %v1811_v26 = vpop.eup %1810 }
 0x764   :  { %v1813_v12 = vpop.eup %1812  ;;  %v1206_v54 = vmul.f32 %v1811_v26, %v2347_v9  ;;  %v1168_v14 = vpop.xlane.xlu0 %1167 }
 0x765   :  { %v1170_v5 = vpop.xlane.xlu1 %1169  ;;  %v1205_v37 = vmul.f32 %v1813_v12, %v2349_v43  ;;  %1820 = vrcp.f32 %v1168_v14 }
 0x766   :  { %1822 = vrcp.f32 %v1170_v5 }
 0x767   :  { %v1221_v2 = vpack.c.bf16 %v1206_v54, %v1205_v37 }
 0x768   :  { %v1815_v28 = vpop.eup %1814 }
 0x769   :  { %v1174_v27 = vpop.xlane.xlu1 %1173  ;;  %1677 = vmatprep.mubr.bf16.mxu0 %v1221_v2  ;;  %v1172_v32 = vpop.xlane.xlu0 %1171  ;;  %v1207_v47 = vmul.f32 %v1815_v28, %v2355_v48 }
 0x76a   :  { %1824 = vrcp.f32 %v1172_v32 }
 0x76b   :  { %v1817_v59 = vpop.eup %1816  ;;  %1826 = vrcp.f32 %v1174_v27 }
 0x76c   :  { %v1208_v29 = vmul.f32 %v1817_v59, %v2362_v60  ;;  %v1819_v16 = vpop.eup %1818 }
 0x76d   :  { %v1178_v13 = vpop.xlane.xlu1 %1177  ;;  %v1176_v35 = vpop.xlane.xlu0 %1175  ;;  %v1209_v10 = vmul.f32 %v1819_v16, %v2360_v7 }
 0x76e   :  { %1828 = vrcp.f32 %v1176_v35  ;;  %v1222_v36 = vpack.c.bf16 %v1208_v29, %v1207_v47 }
 0x76f   :  { %v1821_v9 = vpop.eup %1820  ;;  %1830 = vrcp.f32 %v1178_v13 }
 0x770   :  { %1678 = vmatmul.mubr.bf16.vlgmr.msra.gmra.mrb[48].mxu0 %v1222_v36  ;;  %v1210_v40 = vmul.f32 %v1821_v9, %v2370_v56  ;;  %v1823_v30 = vpop.eup %1822 }
 0x771   :  { %v1182_v23 = vpop.xlane.xlu1 %1181  ;;  %v1180_v43 = vpop.xlane.xlu0 %1179  ;;  %v1211_v46 = vmul.f32 %v1823_v30, %v2368_v63 }
 0x772   :  { %1832 = vrcp.f32 %v1180_v43  ;;  %v1223_v31 = vpack.c.bf16 %v1210_v40, %v1209_v10 }
 0x773   :  { %1834 = vrcp.f32 %v1182_v23 }
 0x774   :  { %v1825_v38 = vpop.eup %1824  ;;  %1681 = vmatprep.mubr.bf16.mxu0 %v1223_v31 }
 0x775   :  { %v1184_v48 = vpop.xlane.xlu0 %1183  ;;  %v1212_v33 = vmul.f32 %v1825_v38, %v2377_v19  ;;  %v1827_v44 = vpop.eup %1826 }
 0x776   :  { %v1186_v39 = vpop.xlane.xlu1 %1185  ;;  %1836 = vrcp.f32 %v1184_v48  ;;  %v1213_v57 = vmul.f32 %v1827_v44, %v2375_v3 }
 0x777   :  { %1838 = vrcp.f32 %v1186_v39  ;;  %v1224_v18 = vpack.c.bf16 %v1212_v33, %v1211_v46 }
 0x778   :  { %v1829_v45 = vpop.eup %1828 }
 0x779   :  { %v1188_v7 = vpop.xlane.xlu0 %1187  ;;  %1682 = vmatmul.mubr.bf16.gmra.mrb[52].mxu0 %v1224_v18  ;;  %v1214_v60 = vmul.f32 %v1829_v45, %v2384_v53  ;;  %v1831_v52 = vpop.eup %1830 }
 0x77a   :  { %1840 = vrcp.f32 %v1188_v7  ;;  %v1215_v50 = vmul.f32 %v1831_v52, %v2382_v8  ;;  %v1403_v8 = vld [vmem:[%s2474_s4 + $0x1] ss:$0 sm:$0xff] }
 0x77b   :  { %v1225_v61 = vpack.c.bf16 %v1214_v60, %v1213_v57 }
 0x77c   :  { %v1833_v11 = vpop.eup %1832 }
 0x77d   :  { %1685 = vmatprep.mubr.bf16.mxu0 %v1225_v61  ;;  %v1216_v55 = vmul.f32 %v1833_v11, %v2390_v51  ;;  %v1835_v63 = vpop.eup %1834 }
 0x77e   :  { %v1217_v1 = vmul.f32 %v1835_v63, %v2388_v24 }
 0x77f   :  { %v1226_v17 = vpack.c.bf16 %v1216_v55, %v1215_v50 }
 0x780   :  { %v1837_v56 = vpop.eup %1836 }
 0x781   :  { %v1839_v4 = vpop.eup %1838  ;;  %1686 = vmatmul.mubr.bf16.gmra.mrb[56].mxu0 %v1226_v17  ;;  %v1218_v0 = vmul.f32 %v1837_v56, %v2394_v49 }
 0x782   :  { %v1219_v19 = vmul.f32 %v1839_v4, %v2396_v25 }
 0x783   :  { %v1227_v15 = vpack.c.bf16 %v1218_v0, %v1217_v1 }
 0x784   :  { %v1841_v3 = vpop.eup %1840 }
 0x785   :  { %v1220_v6 = vmul.f32 %v1841_v3, %v2400_v41  ;;  %1689 = vmatprep.mubr.bf16.mxu0 %v1227_v15 }
 0x787   :  { %v1228_v34 = vpack.c.bf16 %v1220_v6, %v1219_v19 }
 0x789   :  { %1690 = vmatmul.mubr.bf16.gmra.mrb[60].mxu0 %v1228_v34 }
 0x843   :  { %v1679_v20 = vpop.f32.mrb[48].mxu0 }
 0x844   :  { %v1278_v53 = vadd.f32 %v1679_v20, %v1403_v8  ;;  %v1269_v51 = vpop.f32.mrb[49].mxu0 }
 0x845   :  { %v1270_v62 = vadd.f32 %v1403_v8, %v1269_v51  ;;  %v1680_v24 = vpop.f32.mrb[50].mxu0 }
 0x846   :  { %v1334_v42 = vmax.f32 %v1278_v53, 0.0  ;;  %v1281_v49 = vadd.f32 %v1680_v24, %v1403_v8  ;;  %v1272_v58 = vpop.f32.mrb[51].mxu0 }
 0x847   :  { %v1332_v21 = vmax.f32 %v1270_v62, 0.0  ;;  %v1273_v22 = vadd.f32 %v1403_v8, %v1272_v58 }
 0x848   :  { %1350 = vst [vmem:[%s2475_s5 + $0x10] sm:$0xff] %v1334_v42  ;;  %v1335_v25 = vmax.f32 %v1281_v49, 0.0 }
 0x849   :  { %1348 = vst [vmem:[%s2475_s5] sm:$0xff] %v1332_v21  ;;  %v1333_v41 = vmax.f32 %v1273_v22, 0.0 }
 0x84a   :  { %1351 = vst [vmem:[%s2475_s5 + $0x18] sm:$0xff] %v1335_v25 }
 0x84b   :  { %1349 = vst [vmem:[%s2475_s5 + $0x8] sm:$0xff] %v1333_v41 }
 0x84c   :  { %v1683_v26 = vpop.f32.mrb[52].mxu0 }
 0x84d   :  { %v1294_v12 = vadd.f32 %v1683_v26, %v1403_v8  ;;  %v1285_v54 = vpop.f32.mrb[53].mxu0 }
 0x84e   :  { %v1286_v5 = vadd.f32 %v1403_v8, %v1285_v54  ;;  %v1684_v14 = vpop.f32.mrb[54].mxu0 }
 0x84f   :  { %v1338_v37 = vmax.f32 %v1294_v12, 0.0  ;;  %v1297_v2 = vadd.f32 %v1684_v14, %v1403_v8  ;;  %v1288_v27 = vpop.f32.mrb[55].mxu0 }
 0x850   :  { %v1336_v32 = vmax.f32 %v1286_v5, 0.0  ;;  %v1289_v28 = vadd.f32 %v1403_v8, %v1288_v27 }
 0x851   :  { %1354 = vst [vmem:[%s2475_s5 + $0x30] sm:$0xff] %v1338_v37  ;;  %v1339_v59 = vmax.f32 %v1297_v2, 0.0 }
 0x852   :  { %1352 = vst [vmem:[%s2475_s5 + $0x20] sm:$0xff] %v1336_v32  ;;  %v1337_v13 = vmax.f32 %v1289_v28, 0.0 }
 0x853   :  { %1355 = vst [vmem:[%s2475_s5 + $0x38] sm:$0xff] %v1339_v59 }
 0x854   :  { %1353 = vst [vmem:[%s2475_s5 + $0x28] sm:$0xff] %v1337_v13  ;;  %v1687_v35 = vpop.f32.mrb[56].mxu0 }
 0x855   :  { %v1310_v47 = vadd.f32 %v1687_v35, %v1403_v8  ;;  %v1301_v29 = vpop.f32.mrb[57].mxu0 }
 0x856   :  { %v1302_v16 = vadd.f32 %v1403_v8, %v1301_v29  ;;  %v1688_v36 = vpop.f32.mrb[58].mxu0 }
 0x857   :  { %v1342_v9 = vmax.f32 %v1310_v47, 0.0  ;;  %v1313_v23 = vadd.f32 %v1688_v36, %v1403_v8  ;;  %v1304_v43 = vpop.f32.mrb[59].mxu0 }
 0x858   :  { %v1340_v10 = vmax.f32 %v1302_v16, 0.0  ;;  %v1305_v40 = vadd.f32 %v1403_v8, %v1304_v43 }
 0x859   :  { %1358 = vst [vmem:[%s2475_s5 + $0x50] sm:$0xff] %v1342_v9  ;;  %v1343_v30 = vmax.f32 %v1313_v23, 0.0 }
 0x85a   :  { %1356 = vst [vmem:[%s2475_s5 + $0x40] sm:$0xff] %v1340_v10  ;;  %v1341_v31 = vmax.f32 %v1305_v40, 0.0 }
 0x85b   :  { %1359 = vst [vmem:[%s2475_s5 + $0x58] sm:$0xff] %v1343_v30 }
 0x85c   :  { %1357 = vst [vmem:[%s2475_s5 + $0x48] sm:$0xff] %v1341_v31  ;;  %v1691_v38 = vpop.f32.mrb[60].mxu0 }
 0x85d   :  { %v1326_v39 = vadd.f32 %v1691_v38, %v1403_v8  ;;  %v1317_v48 = vpop.f32.mrb[61].mxu0 }
 0x85e   :  { %v1318_v46 = vadd.f32 %v1403_v8, %v1317_v48  ;;  %v1692_v33 = vpop.f32.mrb[62].mxu0 }
 0x85f   :  { %v1346_v44 = vmax.f32 %v1326_v39, 0.0  ;;  %v1329_v18 = vadd.f32 %v1692_v33, %v1403_v8  ;;  %v1320_v45 = vpop.f32.mrb[63].mxu0 }
 0x860   :  { %v1344_v7 = vmax.f32 %v1318_v46, 0.0  ;;  %v1321_v57 = vadd.f32 %v1403_v8, %v1320_v45 }
 0x861   :  { %1362 = vst [vmem:[%s2475_s5 + $0x70] sm:$0xff] %v1346_v44  ;;  %v1347_v60 = vmax.f32 %v1329_v18, 0.0 }
 0x862   :  { %1360 = vst [vmem:[%s2475_s5 + $0x60] sm:$0xff] %v1344_v7  ;;  %v1345_v52 = vmax.f32 %v1321_v57, 0.0 }
 0x863   :  { %1363 = vst [vmem:[%s2475_s5 + $0x78] sm:$0xff] %v1347_v60 }
 0x864   :  { %1361 = vst [vmem:[%s2475_s5 + $0x68] sm:$0xff] %v1345_v52 }

</bundles_post_ra>
